<compile_context>
chip_gen: v7x
topology: tpu7x:2x2x1
jax: 0.10.0
libtpu: 0.0.40
codegen_flags: <defaults>
</compile_context>

<pallas_src>
import jax
import jax.numpy as jnp
from jax.experimental import pallas as pl
from jax.experimental.pallas import tpu as pltpu


def _self_attention_kernel(x_ref, wq_ref, bq_ref, wk_ref, bk_ref,
                           wv_ref, bv_ref, gamma_ref, o_ref):
    x = x_ref[0]  # [C, N]  channels on sublanes, spatial (W*H) on lanes (lane-dense)

    # 1x1 convolutions == channel-mixing matmuls; biases broadcast along lanes.
    q = jnp.dot(wq_ref[...], x, preferred_element_type=jnp.float32) + bq_ref[...]  # [Cq, N]
    k = jnp.dot(wk_ref[...], x, preferred_element_type=jnp.float32) + bk_ref[...]  # [Cq, N]
    v = jnp.dot(wv_ref[...], x, preferred_element_type=jnp.float32) + bv_ref[...]  # [C,  N]

    # energy[i, j] = <q[:, i], k[:, j]>        (torch.bmm(proj_query, proj_key))
    energy = jnp.dot(q.T, k, preferred_element_type=jnp.float32)                   # [N, N]

    # numerically stable row softmax over j (EUP exp, XLU lane-reduce)
    m = jnp.max(energy, axis=-1, keepdims=True)
    p = jnp.exp(energy - m)
    attn = p / jnp.sum(p, axis=-1, keepdims=True)                                  # [N, N]

    # out[c, i] = sum_j v[c, j] * attn[i, j]   (torch.bmm(proj_value, attention^T))
    out = jnp.dot(v, attn.T, preferred_element_type=jnp.float32)                   # [C, N]

    # gamma-scaled residual, written back lane-dense.
    o_ref[0] = (gamma_ref[...] * out + x).astype(o_ref.dtype)


def self_attention(x, w_query, b_query, w_key, b_key, w_value, b_value, gamma):
    """Pallas forward of the PyTorch SelfAttention module.

    x        : [B, C, W, H]  (NCHW)
    w_query  : [C//8, C]  (= query_conv.weight[:, :, 0, 0]),   b_query : [C//8]
    w_key    : [C//8, C],                                       b_key   : [C//8]
    w_value  : [C,    C],                                       b_value : [C]
    gamma    : scalar
    returns  : [B, C, W, H]  (gamma * attention_out + x)
    """
    B, C, W, H = x.shape
    N = W * H
    Cq = w_query.shape[0]

    # Free reshape only (no transpose): NCHW -> [B, C, N].
    x_cn = x.reshape(B, C, N)
    bq = b_query.reshape(Cq, 1).astype(jnp.float32)
    bk = b_key.reshape(Cq, 1).astype(jnp.float32)
    bv = b_value.reshape(C, 1).astype(jnp.float32)
    g = jnp.asarray(gamma, jnp.float32).reshape(1, 1)

    # Weights/biases/gamma: constant block index -> resident in VMEM across the grid.
    resident = lambda shape: pl.BlockSpec(shape, lambda b: (0, 0))

    out_cn = pl.pallas_call(
        _self_attention_kernel,
        out_shape=jax.ShapeDtypeStruct((B, C, N), x.dtype),
        grid=(B,),
        in_specs=[
            pl.BlockSpec((1, C, N), lambda b: (b, 0, 0)),  # x: one image per grid step
            resident((Cq, C)), resident((Cq, 1)),          # query 1x1 conv
            resident((Cq, C)), resident((Cq, 1)),          # key   1x1 conv
            resident((C, C)),  resident((C, 1)),           # value 1x1 conv
            resident((1, 1)),                              # gamma
        ],
        out_specs=pl.BlockSpec((1, C, N), lambda b: (b, 0, 0)),
        compiler_params=pltpu.CompilerParams(
            dimension_semantics=("parallel",),             # batch shards across TCs (v7x)
        ),
    )(x_cn, w_query, bq, w_key, bk, w_value, bv, g)

    return out_cn.reshape(B, C, W, H)


if __name__ == "__main__":
    B, C, Wd, Hd = 2, 64, 16, 16          # in_dim=64 -> query/key channels = 8, N = 256
    Cq = C // 8

    key = jax.random.PRNGKey(0)
    kx, kwq, kbq, kwk, kbk, kwv, kbv = jax.random.split(key, 7)

    x = jax.random.normal(kx, (B, C, Wd, Hd), dtype=jnp.float32)

    # Conv2d(kernel_size=1) default init: uniform(+-1/sqrt(fan_in)).
    bound = 1.0 / (C ** 0.5)
    u = lambda k, shape: jax.random.uniform(k, shape, minval=-bound, maxval=bound,
                                            dtype=jnp.float32)
    w_query, b_query = u(kwq, (Cq, C)), u(kbq, (Cq,))
    w_key,   b_key   = u(kwk, (Cq, C)), u(kbk, (Cq,))
    w_value, b_value = u(kwv, (C, C)),  u(kbv, (C,))
    # The module initializes gamma = 0 (which would make out == x and hide the
    # attention path); use a nonzero value so the whole kernel is exercised.
    gamma = jnp.float32(0.75)

    out = self_attention(x, w_query, b_query, w_key, b_key, w_value, b_value, gamma)
    jax.block_until_ready(out)

    # Pure-JAX reference mirroring the PyTorch forward exactly.
    N = Wd * Hd
    hp = jax.lax.Precision.HIGHEST
    xf = x.reshape(B, C, N)
    q = jnp.einsum('oc,bcn->bon', w_query, xf, precision=hp) + b_query[None, :, None]
    k = jnp.einsum('oc,bcn->bon', w_key,   xf, precision=hp) + b_key[None, :, None]
    v = jnp.einsum('oc,bcn->bon', w_value, xf, precision=hp) + b_value[None, :, None]
    energy = jnp.einsum('bci,bcj->bij', q, k, precision=hp)          # [B, N, N]
    attn = jax.nn.softmax(energy, axis=-1)
    out_ref = jnp.einsum('bcj,bij->bci', v, attn, precision=hp)      # [B, C, N]
    out_ref = gamma * out_ref.reshape(B, C, Wd, Hd) + x

    max_err = float(jnp.max(jnp.abs(out - out_ref)))
    assert jnp.allclose(out, out_ref, atol=1e-3, rtol=1e-3), f"max abs err = {max_err}"
    print("KERNEL_OK")
</pallas_src>

<mosaic_0001>
module attributes {stable_mosaic.version = 11 : i64} {
  func.func @_self_attention_kernel(%arg0: i32, %arg1: memref<1x64x256xf32, #tpu.memory_space<vmem>>, %arg2: memref<8x64xf32, #tpu.memory_space<vmem>>, %arg3: memref<8x1xf32, #tpu.memory_space<vmem>>, %arg4: memref<8x64xf32, #tpu.memory_space<vmem>>, %arg5: memref<8x1xf32, #tpu.memory_space<vmem>>, %arg6: memref<64x64xf32, #tpu.memory_space<vmem>>, %arg7: memref<64x1xf32, #tpu.memory_space<vmem>>, %arg8: memref<1x1xf32, #tpu.memory_space<vmem>>, %arg9: memref<1x64x256xf32, #tpu.memory_space<vmem>>) attributes {dimension_semantics = [#tpu.dimension_semantics<parallel>], iteration_bounds = array<i64: 2>, scalar_prefetch = 0 : i64, scratch_operands = 0 : i64, tpu.core_type = #tpu.core_type<tc>, window_params = [{transform_indices = @transform_0, window_bounds = array<i64: 1, 64, 256>}, {pipeline_mode = #tpu.pipeline_mode<synchronous>, transform_indices = @transform_1, window_bounds = array<i64: 8, 64>}, {pipeline_mode = #tpu.pipeline_mode<synchronous>, transform_indices = @transform_2, window_bounds = array<i64: 8, 1>}, {pipeline_mode = #tpu.pipeline_mode<synchronous>, transform_indices = @transform_3, window_bounds = array<i64: 8, 64>}, {pipeline_mode = #tpu.pipeline_mode<synchronous>, transform_indices = @transform_4, window_bounds = array<i64: 8, 1>}, {pipeline_mode = #tpu.pipeline_mode<synchronous>, transform_indices = @transform_5, window_bounds = array<i64: 64, 64>}, {pipeline_mode = #tpu.pipeline_mode<synchronous>, transform_indices = @transform_6, window_bounds = array<i64: 64, 1>}, {pipeline_mode = #tpu.pipeline_mode<synchronous>, transform_indices = @transform_7, window_bounds = array<i64: 1, 1>}, {transform_indices = @transform_8, window_bounds = array<i64: 1, 64, 256>}]} {
    %c0 = arith.constant 0 : index
    %c0_0 = arith.constant 0 : index
    %c0_1 = arith.constant 0 : index
    %0 = vector.load %arg1[%c0, %c0_0, %c0_1] : memref<1x64x256xf32, #tpu.memory_space<vmem>>, vector<1x64x256xf32>
    %1 = vector.shape_cast %0 : vector<1x64x256xf32> to vector<64x256xf32>
    %c0_2 = arith.constant 0 : index
    %c0_3 = arith.constant 0 : index
    %2 = vector.load %arg2[%c0_2, %c0_3] : memref<8x64xf32, #tpu.memory_space<vmem>>, vector<8x64xf32>
    %cst = arith.constant dense<0.000000e+00> : vector<8x256xf32>
    %3 = tpu.matmul %2, %1, %cst {dimension_numbers = #tpu.dot_dimension_numbers<[1], [0], [0], [1], [0, 0, 1, 1], [], []>} : vector<8x64xf32>, vector<64x256xf32>, vector<8x256xf32> -> vector<8x256xf32>
    %c0_4 = arith.constant 0 : index
    %c0_5 = arith.constant 0 : index
    %4 = vector.load %arg3[%c0_4, %c0_5] : memref<8x1xf32, #tpu.memory_space<vmem>>, vector<8x1xf32>
    %5 = vector.broadcast %4 : vector<8x1xf32> to vector<8x256xf32>
    %6 = arith.addf %3, %5 : vector<8x256xf32>
    %c0_6 = arith.constant 0 : index
    %c0_7 = arith.constant 0 : index
    %7 = vector.load %arg4[%c0_6, %c0_7] : memref<8x64xf32, #tpu.memory_space<vmem>>, vector<8x64xf32>
    %cst_8 = arith.constant dense<0.000000e+00> : vector<8x256xf32>
    %8 = tpu.matmul %7, %1, %cst_8 {dimension_numbers = #tpu.dot_dimension_numbers<[1], [0], [0], [1], [0, 0, 1, 1], [], []>} : vector<8x64xf32>, vector<64x256xf32>, vector<8x256xf32> -> vector<8x256xf32>
    %c0_9 = arith.constant 0 : index
    %c0_10 = arith.constant 0 : index
    %9 = vector.load %arg5[%c0_9, %c0_10] : memref<8x1xf32, #tpu.memory_space<vmem>>, vector<8x1xf32>
    %10 = vector.broadcast %9 : vector<8x1xf32> to vector<8x256xf32>
    %11 = arith.addf %8, %10 : vector<8x256xf32>
    %c0_11 = arith.constant 0 : index
    %c0_12 = arith.constant 0 : index
    %12 = vector.load %arg6[%c0_11, %c0_12] : memref<64x64xf32, #tpu.memory_space<vmem>>, vector<64x64xf32>
    %cst_13 = arith.constant dense<0.000000e+00> : vector<64x256xf32>
    %13 = tpu.matmul %12, %1, %cst_13 {dimension_numbers = #tpu.dot_dimension_numbers<[1], [0], [0], [1], [0, 0, 1, 1], [], []>} : vector<64x64xf32>, vector<64x256xf32>, vector<64x256xf32> -> vector<64x256xf32>
    %c0_14 = arith.constant 0 : index
    %c0_15 = arith.constant 0 : index
    %14 = vector.load %arg7[%c0_14, %c0_15] : memref<64x1xf32, #tpu.memory_space<vmem>>, vector<64x1xf32>
    %15 = vector.broadcast %14 : vector<64x1xf32> to vector<64x256xf32>
    %16 = arith.addf %13, %15 : vector<64x256xf32>
    %17 = tpu.transpose %6, [1, 0] : vector<8x256xf32> -> vector<256x8xf32>
    %cst_16 = arith.constant dense<0.000000e+00> : vector<256x256xf32>
    %18 = tpu.matmul %17, %11, %cst_16 {dimension_numbers = #tpu.dot_dimension_numbers<[1], [0], [0], [1], [0, 0, 1, 1], [], []>} : vector<256x8xf32>, vector<8x256xf32>, vector<256x256xf32> -> vector<256x256xf32>
    %cst_17 = arith.constant dense<0xFF800000> : vector<256xf32>
    %19 = vector.multi_reduction <maximumf>, %18, %cst_17 [1] : vector<256x256xf32> to vector<256xf32>
    %20 = vector.shape_cast %19 : vector<256xf32> to vector<256x1xf32>
    %21 = vector.broadcast %20 : vector<256x1xf32> to vector<256x256xf32>
    %22 = arith.subf %18, %21 : vector<256x256xf32>
    %23 = math.exp %22 : vector<256x256xf32>
    %cst_18 = arith.constant dense<0.000000e+00> : vector<256xf32>
    %24 = vector.multi_reduction <add>, %23, %cst_18 [1] : vector<256x256xf32> to vector<256xf32>
    %25 = vector.shape_cast %24 : vector<256xf32> to vector<256x1xf32>
    %26 = vector.broadcast %25 : vector<256x1xf32> to vector<256x256xf32>
    %27 = arith.divf %23, %26 : vector<256x256xf32>
    %28 = tpu.transpose %27, [1, 0] : vector<256x256xf32> -> vector<256x256xf32>
    %cst_19 = arith.constant dense<0.000000e+00> : vector<64x256xf32>
    %29 = tpu.matmul %16, %28, %cst_19 {dimension_numbers = #tpu.dot_dimension_numbers<[1], [0], [0], [1], [0, 0, 1, 1], [], []>} : vector<64x256xf32>, vector<256x256xf32>, vector<64x256xf32> -> vector<64x256xf32>
    %c0_20 = arith.constant 0 : index
    %c0_21 = arith.constant 0 : index
    %30 = vector.load %arg8[%c0_20, %c0_21] : memref<1x1xf32, #tpu.memory_space<vmem>>, vector<1x1xf32>
    %31 = vector.broadcast %30 : vector<1x1xf32> to vector<64x256xf32>
    %32 = arith.mulf %31, %29 : vector<64x256xf32>
    %33 = arith.addf %32, %1 : vector<64x256xf32>
    %c0_22 = arith.constant 0 : index
    %c0_23 = arith.constant 0 : index
    %c0_24 = arith.constant 0 : index
    %34 = vector.load %arg9[%c0_22, %c0_23, %c0_24] : memref<1x64x256xf32, #tpu.memory_space<vmem>>, vector<1x64x256xf32>
    %35 = vector.shape_cast %34 : vector<1x64x256xf32> to vector<64x256xf32>
    %36 = vector.shape_cast %33 : vector<64x256xf32> to vector<1x64x256xf32>
    tpu.vector_store %arg9[%c0_22, %c0_23, %c0_24], %36 {strides = array<i32>} : memref<1x64x256xf32, #tpu.memory_space<vmem>>, vector<1x64x256xf32>,
    return
  }
  func.func @transform_0(%arg0: i32) -> (i32, i32, i32) {
    %c0_i32 = arith.constant 0 : i32
    %c0_i32_0 = arith.constant 0 : i32
    %c0_i32_1 = arith.constant 0 : i32
    return %arg0, %c0_i32, %c0_i32_0 : i32, i32, i32
  }
  func.func @transform_1(%arg0: i32) -> (i32, i32) {
    %c0_i32 = arith.constant 0 : i32
    %c0_i32_0 = arith.constant 0 : i32
    %c0_i32_1 = arith.constant 0 : i32
    return %c0_i32, %c0_i32_0 : i32, i32
  }
  func.func @transform_2(%arg0: i32) -> (i32, i32) {
    %c0_i32 = arith.constant 0 : i32
    %c0_i32_0 = arith.constant 0 : i32
    %c0_i32_1 = arith.constant 0 : i32
    return %c0_i32, %c0_i32_0 : i32, i32
  }
  func.func @transform_3(%arg0: i32) -> (i32, i32) {
    %c0_i32 = arith.constant 0 : i32
    %c0_i32_0 = arith.constant 0 : i32
    %c0_i32_1 = arith.constant 0 : i32
    return %c0_i32, %c0_i32_0 : i32, i32
  }
  func.func @transform_4(%arg0: i32) -> (i32, i32) {
    %c0_i32 = arith.constant 0 : i32
    %c0_i32_0 = arith.constant 0 : i32
    %c0_i32_1 = arith.constant 0 : i32
    return %c0_i32, %c0_i32_0 : i32, i32
  }
  func.func @transform_5(%arg0: i32) -> (i32, i32) {
    %c0_i32 = arith.constant 0 : i32
    %c0_i32_0 = arith.constant 0 : i32
    %c0_i32_1 = arith.constant 0 : i32
    return %c0_i32, %c0_i32_0 : i32, i32
  }
  func.func @transform_6(%arg0: i32) -> (i32, i32) {
    %c0_i32 = arith.constant 0 : i32
    %c0_i32_0 = arith.constant 0 : i32
    %c0_i32_1 = arith.constant 0 : i32
    return %c0_i32, %c0_i32_0 : i32, i32
  }
  func.func @transform_7(%arg0: i32) -> (i32, i32) {
    %c0_i32 = arith.constant 0 : i32
    %c0_i32_0 = arith.constant 0 : i32
    %c0_i32_1 = arith.constant 0 : i32
    return %c0_i32, %c0_i32_0 : i32, i32
  }
  func.func @transform_8(%arg0: i32) -> (i32, i32, i32) {
    %c0_i32 = arith.constant 0 : i32
    %c0_i32_0 = arith.constant 0 : i32
    %c0_i32_1 = arith.constant 0 : i32
    return %arg0, %c0_i32, %c0_i32_0 : i32, i32, i32
  }
}

</mosaic_0001>

<bundles_post_ra>
// kernel: tpu_custom_call.1
= control target key start
LH: loop header
LB: loop body
LE: loop exit
PB: predicated region body
PF: predicated region fallthrough
CT: control target
= control target key end

     0   :  { %s3390_s0 = inlined_call_operand.hbm [shape: f32[2,64,256], index: 0, kind: input, shape index: {}]   ;;  %s3391_s1 = inlined_call_operand.vmem [shape: f32[8,64], index: 1, kind: input, shape index: {}]   ;;  %s3392_s2 = inlined_call_operand.vmem [shape: f32[8,1], index: 2, kind: input, shape index: {}]   ;;  %s3393_s3 = inlined_call_operand.vmem [shape: f32[8,64], index: 3, kind: input, shape index: {}]   ;;  %s3394_s4 = inlined_call_operand.vmem [shape: f32[8,1], index: 4, kind: input, shape index: {}]   ;;  %s3395_s5 = inlined_call_operand.vmem [shape: f32[64,64], index: 5, kind: input, shape index: {}]   ;;  %s3396_s6 = inlined_call_operand.vmem [shape: f32[64,1], index: 6, kind: input, shape index: {}]   ;;  %s3397_s7 = inlined_call_operand.<no memory space> [shape: f32[1,1], index: 7, kind: input, shape index: {}]   ;;  %s3398_s8 = inlined_call_operand.hbm [shape: f32[2,64,256], index: 8, kind: output, shape index: {}]  }
   0x1   :  { %v13_v0 = vstv %s3397_s7 }
   0x2   :  { %14 = vst [vmem:[#allocation2] sm:$0x1] %v13_v0 }
   0x3   :  { %15 = vsyncpa [#allocation4], 0 }
   0x4   :  { %17 = vsyncpa [#allocation4 + $0x1], 0 }
   0x5   :  { %18 = vsyncpa [#allocation5], 0 }
   0x6   :  { %20 = vsyncpa [#allocation5 + $0x1], 0  ;;  %s2441_s29 = smov 0   ;;  %s2443_s30 = smov 0  }
   0x7   :  { %s2445_s9 = smov 0   ;;  %s2447_s10 = smov 0  }
   0x8 LB: > { %s2462_s7 = sadd.s32 4294967295, %s2383_s10   ;;  %s1854_s11 = sadd.s32 4294967294, %s2383_s10   ;;  %s2383_s10 = sphi %s2447_s10, %s3496_s10   ;;  %s2379_s9 = sphi %s2445_s9, %s3495_s9   ;;  %s2375_s30 = sphi %s2443_s30, %s3494_s30   ;;  %s2371_s29 = sphi %s2441_s29, %s3493_s29  }
   0x9   : > { %s2466_s12 = sadd.s32 1, %s2383_s10   ;;  %s33_s13 = sadd.s32 1, %s2379_s9 }
   0xa   : > { %s30_s14 = ssub.s32 %s2383_s10, %s2466_s12  ;;  %p40_p0 = scmp.ne.s32.totalorder %s2379_s9, %s2375_s30 }
   0xb   : > { %p31_p1 = scmp.eq.s32.totalorder %s30_s14, 0  ;;  %p41_p2 = scmp.eq.s32.totalorder %s2383_s10, 0 }
   0xc   : > { %p46_p3 = scmp.ne.s32.totalorder %s2375_s30, %s2371_s29  ;;  %p47_p4 = scmp.eq.s32.totalorder %s2462_s7, 0 }
   0xd   : > { %s2478_s15 = scalar_select %p31_p1, %s2379_s9, %s33_s13  }
   0xe   : > { %p2480_p5 = por %p41_p2, %p40_p0  ;;  %p2484_p6 = por %p47_p4, %p46_p3 }
   0xf   : > { %p217_p7 = scmp.eq.s32.totalorder %s2462_s7, 1  ;;  %p223_p8 = scmp.eq.s32.totalorder %s1854_s11, 1 }
  0x10   : > { %p2037_p10 = scmp.lt.s32.totalorder %s2383_s10, 2  ;;  %s264_s20 = sand.u32 1, %s2379_s9  }
  0x11   : > { %p2491_p11 = por %p217_p7, %p40_p0  ;;  %p2495_p12 = por %p223_p8, %p46_p3 }
  0x12   : > { %s1911_s21 = sshll.u32 %s2383_s10, 11  ;;  %s1857_s22 = sshll.u32 %s264_s20, 7 }
  0x13   : > { %s3430_s18 = scalar_select %p2491_p11, 1, 0 }
  0x14   : > { %s3431_s19 = scalar_select %p2495_p12, 1, 0 }
  0x15   : > { %s2504_s25 = scalar_lea.hbm %s3390_s0, %s1911_s21  ;;  %s268_s26 = scalar_lea.vmem [#allocation3], %s1857_s22 }
  0x16   : > { %s275_s27 = sshll.u32 %s268_s26, 4  ;;  %p2508_p13 = pnand %p2037_p10, %p2480_p5  ;;  %s2512_s27 = int_to_ptr.vmem [resolvable:$true] %s275_s27 }
  0x17   : > { %s2514_s11 = scalar_lea.sflag [#allocation4], %s264_s20  ;;  %s2287_s13 = scalar_lea.hbm %s2504_s25, 2048 }
  0x18   : > { %p2288_p0 = scmp.ne.s32.totalorder %s2504_s25, %s2287_s13  ;;  %p2289_p1 = pneg %p2508_p13 }
  0x19   : > { %s2292_s21 = scalar_lea.hbm %s3390_s0, 4096  ;;  %p2293_p4 = scmp.lt.u32.totalorder %s2504_s25, %s3390_s0 }
  0x1a   : > { %p2290_p2 = pnand %p2289_p1, %p2288_p0  ;;  %p2294_p5 = scmp.lt.u32.totalorder %s2292_s21, %s2287_s13 }
  0x1b   : > { %p2296_p8 = scmp.lt.u32.totalorder %s2287_s13, %s2504_s25 }
  0x1c   : > { %p2291_p3 = pneg %p2290_p2  ;;  %p2295_p7 = por %p2294_p5, %p2293_p4 }
  0x1e   : > { %p2297_p10 = por %p2296_p8, %p2295_p7 }
  0x20   : > { %p2298_p9 = pnand %p2297_p10, %p2291_p3 }
  0x22   : > { %2301 = shalt.err (!%p2298_p9)
}
  0x23   : > { %s2302_s20 = scalar_lea.vmem %s2512_s27, 2048  ;;  %s2385_s24 = smov [#allocation3]  }
  0x24   : > { %p2303_p0 = scmp.ne.s32.totalorder %s2512_s27, %s2302_s20  ;;  %s2307_s26 = sshll.u32 %s2385_s24, 4  ;;  %s2308_s26 = int_to_ptr.vmem [resolvable:$false] %s2307_s26 }
  0x25   : > { %s2309_s14 = scalar_lea.vmem %s2308_s26, 4096  ;;  %p2310_p11 = scmp.lt.s32.totalorder %s2512_s27, %s2308_s26 }
  0x26   : > { %p2305_p2 = pnand %p2303_p0, %p2289_p1  ;;  %p2311_p4 = scmp.lt.s32.totalorder %s2309_s14, %s2302_s20 }
  0x28   : > { %p2306_p12 = pneg %p2305_p2  ;;  %p2312_p5 = por %p2311_p4, %p2310_p11 }
  0x2a   : > { %p2313_p7 = pnand %p2312_p5, %p2306_p12 }
  0x2c   : > { %2316 = shalt.err (!%p2313_p7)
}
  0x2d   : > { %s2386_s13 = smov 256   ;;  %s2387_s16 = smov 16  }
  0x2e   : > { %2032 = dma.hbm_to_vmem [thread:$0]  (!%p2508_p13), %s2504_s25, 2048, %s2512_s27, %s2514_s11, %s2386_s13, %s2386_s13, %s2387_s16  }
  0x2f   : > { %p1860_p9 = scmp.ge.s32.totalorder %s2383_s10, 1  ;;  %p283_p1 = scmp.lt.s32.totalorder %s2383_s10, 3 }
  0x31   : > { %p284_p3 = pnand %p1860_p9, %p283_p1 }
  0x33   : > { %287 = sbr.rel (%p284_p3) target bundleno = 1416 (0x588), region = 52 }
  0x3a   : > { %s2545_s21 = sand.u32 1, %s2375_s30  }
  0x3b   : > { %s1861_s22 = sshll.u32 %s2545_s21, 7  ;;  %s290_s23 = scalar_lea.sflag [#allocation4], %s2545_s21 }
  0x3c   : > { %s2551_s20 = scalar_lea.vmem [#allocation3], %s1861_s22 }
  0x3d   : > { %2362 = dma.done.wait (%p2484_p6), %s290_s23, 2048  }
  0x3e   : > { %2364 = vsyncadd (%p2484_p6), %s290_s23, 4294965248  ;;  %v3400_v1 = vmov 0.0   ;;  %v2389_v2 = vmov 0   ;;  %v327_v3 = vld [vmem:[%s2551_s20 + $0x8] sm:$0xff]  ;;  %v329_v4 = vld [vmem:[%s2551_s20 + $0x18] sm:$0xff]  ;;  %vm349_vm0 = vcmask 523264  }
  0x3f   : > { %417 = vmatprep.mubr.f32.mxu0 %v3400_v1  ;;  %2077 = vset.pattern.permute.xlu0 %v2389_v2  ;;  %v326_v5 = vld [vmem:[%s2551_s20] sm:$0xff]  ;;  %v1913_v6 = vpack.c.bf16 %v329_v4, %v327_v3  ;;  %v328_v7 = vld [vmem:[%s2551_s20 + $0x10] sm:$0xff]  ;;  %v331_v8 = vld [vmem:[%s2551_s20 + $0x28] sm:$0xff]  ;;  %vm762_vm1 = vcmask 64512   ;;  %s3293_s14 = scalar_lea.vmem [#allocation6], %s1861_s22  ;;  %s1912_s22 = sshll.u32 %s2462_s7, 11 }
  0x40   : > { %923 = vmatprep.mubr.f32.mxu1 %v3400_v1  ;;  %v333_v9 = vld [vmem:[%s2551_s20 + $0x38] sm:$0xff]  ;;  %v1915_v10 = vpack.c.bf16 %v328_v7, %v326_v5  ;;  %v330_v12 = vld [vmem:[%s2551_s20 + $0x20] sm:$0xff]  ;;  %v332_v13 = vld [vmem:[%s2551_s20 + $0x30] sm:$0xff]  ;;  %s1781_s13 = sshll.u32 %s3293_s14, 4  ;;  %s3341_s17 = scalar_lea.hbm %s3398_s8, %s1912_s22  ;;  %s3343_s13 = int_to_ptr.vmem [resolvable:$true] %s1781_s13 }
  0x41   : > { %v1917_v11 = vpack.c.bf16 %v333_v9, %v331_v8  ;;  %v335_v14 = vld [vmem:[%s2551_s20 + $0x48] sm:$0xff]  ;;  %1914 = vmatprep.subr.bf16.mxu0 %v1913_v6  ;;  %v337_v15 = vld [vmem:[%s2551_s20 + $0x58] sm:$0xff]  ;;  %v1919_v16 = vpack.c.bf16 %v332_v13, %v330_v12  ;;  %v334_v18 = vld [vmem:[%s2551_s20 + $0x40] sm:$0xff]  ;;  %s1768_s7 = scalar_lea.sflag [#allocation5], %s2545_s21  ;;  %s2317_s25 = scalar_lea.vmem %s3343_s13, 2048 }
  0x42   : > { %1916 = vmatpush1.bf16.msra.mxu0 %v1915_v10  ;;  %v1921_v17 = vpack.c.bf16 %v337_v15, %v335_v14  ;;  %v336_v19 = vld [vmem:[%s2551_s20 + $0x50] sm:$0xff]  ;;  %v339_v20 = vld [vmem:[%s2551_s20 + $0x68] sm:$0xff]  ;;  %v341_v21 = vld [vmem:[%s2551_s20 + $0x78] sm:$0xff]  ;;  %p2318_p6 = scmp.ne.s32.totalorder %s3343_s13, %s2317_s25  ;;  %p3490_p11 = scmp.ne.s32.totalorder %s3430_s18, 0 }
  0x43   : > { %1918 = vmatprep.subr.bf16.mxu0 %v1917_v11  ;;  %v343_v22 = vld [vmem:[%s3392_s2] sm:$0xff]  ;;  %v1923_v23 = vpack.c.bf16 %v336_v19, %v334_v18  ;;  %v1925_v25 = vpack.c.bf16 %v341_v21, %v339_v20  ;;  %v340_v27 = vld [vmem:[%s2551_s20 + $0x70] sm:$0xff]  ;;  %s2390_s27 = smov [#allocation6]  }
  0x44   : > { %346 = vperm.xlu0 %2077, %v343_v22   ;;  %v425_v24 = vld [vmem:[%s3394_s4] sm:$0xff]  ;;  %p2319_p12 = pnand %p2318_p6, %p3490_p11  ;;  %s2321_s28 = sshll.u32 %s2390_s27, 4  ;;  %s2322_s28 = int_to_ptr.vmem [resolvable:$false] %s2321_s28 }
  0x45   : > { %v338_v26 = vld [vmem:[%s2551_s20 + $0x60] sm:$0xff]  ;;  %s2323_s11 = scalar_lea.vmem %s2322_s28, 4096  ;;  %p2324_p8 = scmp.lt.s32.totalorder %s3343_s13, %s2322_s28 }
  0x46   : > { %1920 = vmatpush1.bf16.msra.mxu0 %v1919_v16  ;;  %v1927_v28 = vpack.c.bf16 %v340_v27, %v338_v26  ;;  %v342_v29 = vld [vmem:[%s3391_s1] sm:$0xff]  ;;  %p2320_p13 = pneg %p2319_p12  ;;  %p2325_p10 = scmp.lt.s32.totalorder %s2323_s11, %s2317_s25 }
  0x47   : > { %1922 = vmatprep.subr.bf16.mxu0 %v1921_v17  ;;  %v424_v30 = vld [vmem:[%s3393_s3] sm:$0xff] }
  0x48   : > { %428 = vperm.xlu0 %2077, %v425_v24   ;;  %p2326_p0 = por %p2325_p10, %p2324_p8 }
  0x4a   : > { %1924 = vmatpush1.bf16.msra.mxu0 %v1923_v23  ;;  %p2327_p2 = pnand %p2326_p0, %p2320_p13 }
  0x4b   : > { %1926 = vmatprep.subr.bf16.mxu0 %v1925_v25 }
  0x4e   : > { %1928 = vmatpush1.bf16.msra.mxu0 %v1927_v28 }
  0x4f   : > { %1930 = vmatprep.subr.bf16.mxu0 %v1913_v6 }
  0x51   : > { %1863 = vmatmul.mubr.msk.f32.vlgmr.msra.gmra.mrb[0].mxu0 %vm349_vm0, %v342_v29 }
  0x52   : > { %1932 = vmatpush1.bf16.msra.mxu0 %v1915_v10  ;;  %498 = vmatprep.mubr.f32.mxu0 %v3400_v1 }
  0x53   : > { %1934 = vmatprep.subr.bf16.mxu0 %v1917_v11 }
  0x56   : > { %1936 = vmatpush1.bf16.msra.mxu0 %v1919_v16 }
  0x57   : > { %1938 = vmatprep.subr.bf16.mxu0 %v1921_v17 }
  0x5a   : > { %1940 = vmatpush1.bf16.msra.mxu0 %v1923_v23 }
  0x5b   : > { %1942 = vmatprep.subr.bf16.mxu0 %v1925_v25 }
  0x5e   : > { %1944 = vmatpush1.bf16.msra.mxu0 %v1927_v28 }
  0x5f   : > { %1946 = vmatprep.subr.bf16.mxu0 %v1913_v6 }
  0x61   : > { %1864 = vmatmul.mubr.msk.f32.vlgmr.msra.gmra.mrb[2].mxu0 %vm349_vm0, %v424_v30 }
  0x62   : > { %1948 = vmatpush1.bf16.msra.mxu0 %v1915_v10  ;;  %649 = vmatprep.mubr.f32.mxu0 %v3400_v1 }
  0x63   : > { %1950 = vmatprep.subr.bf16.mxu0 %v1917_v11 }
  0x66   : > { %1952 = vmatpush1.bf16.msra.mxu0 %v1919_v16 }
  0x67   : > { %1954 = vmatprep.subr.bf16.mxu0 %v1921_v17 }
  0x6a   : > { %1956 = vmatpush1.bf16.msra.mxu0 %v1923_v23 }
  0x6b   : > { %1958 = vmatprep.subr.bf16.mxu0 %v1925_v25 }
  0x6e   : > { %1960 = vmatpush1.bf16.msra.mxu0 %v1927_v28 }
  0xc3   : > { %v347_v31 = vpop.permute.xlu0 %346 }
  0xc7   : > { %v429_v36 = vpop.permute.xlu0 %428 }
 0x124   : > { %v419_v32 = vpop.f32.mrb[0].mxu0 }
 0x125   : > { %v421_v33 = vpop.f32.mrb[1].mxu0  ;;  %v420_v34 = vadd.f32 %v419_v32, %v347_v31 }
 0x126   : > { %v422_v40 = vadd.f32 %v421_v33, %v347_v31 }
 0x127   : > { %698 = vxpose.xlu1.b32.start.end [1/1] (short) %v420_v34, 128 }
 0x134   : > { %v500_v35 = vpop.f32.mrb[2].mxu0 }
 0x135   : > { %v502_v37 = vpop.f32.mrb[3].mxu0  ;;  %v501_v39 = vadd.f32 %v500_v35, %v429_v36 }
 0x136   : > { %v503_v38 = vadd.f32 %v502_v37, %v429_v36 }
 0x138   : > { %859 = vmatprep.subr.mxu1 %v503_v38 }
 0x139   : > { %860 = vmatpush1.msra.mxu1 %v501_v39 }
 0x164   : > { %730 = vxpose.xlu1.b32.start.end [1/1] (short) %v422_v40, 128 }
 0x182   : > { %2078 = vset.pattern.permute.xlu1 %v2389_v2 }
 0x1a7   : > { %v714_v41 = vpop.trf.xlu1 }
 0x1a8   : > { %1873 = vmatmul.mubr.msk.f32.vlgmr.msra.gmra.mrb[0].mxu1 %vm762_vm1, %v714_v41 }
 0x1a9   : > { %929 = vmatprep.mubr.f32.mxu1 %v3400_v1 }
 0x1ab   : > { %v715_v42 = vpop.trf.xlu1 }
 0x1ac   : > { %1874 = vmatmul.mubr.msk.f32.gmra.mrb[2].mxu1 %vm762_vm1, %v715_v42 }
 0x1ad   : > { %935 = vmatprep.mubr.f32.mxu1 %v3400_v1 }
 0x1af   : > { %v716_v43 = vpop.trf.xlu1 }
 0x1b0   : > { %1875 = vmatmul.mubr.msk.f32.gmra.mrb[4].mxu1 %vm762_vm1, %v716_v43 }
 0x1b1   : > { %941 = vmatprep.mubr.f32.mxu1 %v3400_v1 }
 0x1b3   : > { %v717_v44 = vpop.trf.xlu1 }
 0x1b4   : > { %1876 = vmatmul.mubr.msk.f32.gmra.mrb[6].mxu1 %vm762_vm1, %v717_v44 }
 0x1b5   : > { %947 = vmatprep.mubr.f32.mxu1 %v3400_v1 }
 0x1b7   : > { %v718_v45 = vpop.trf.xlu1 }
 0x1b8   : > { %1877 = vmatmul.mubr.msk.f32.gmra.mrb[8].mxu1 %vm762_vm1, %v718_v45 }
 0x1b9   : > { %953 = vmatprep.mubr.f32.mxu1 %v3400_v1 }
 0x1bb   : > { %v719_v46 = vpop.trf.xlu1 }
 0x1bc   : > { %1878 = vmatmul.mubr.msk.f32.gmra.mrb[10].mxu1 %vm762_vm1, %v719_v46 }
 0x1bd   : > { %959 = vmatprep.mubr.f32.mxu1 %v3400_v1 }
 0x1bf   : > { %v720_v47 = vpop.trf.xlu1 }
 0x1c0   : > { %1879 = vmatmul.mubr.msk.f32.gmra.mrb[12].mxu1 %vm762_vm1, %v720_v47 }
 0x1c1   : > { %965 = vmatprep.mubr.f32.mxu1 %v3400_v1 }
 0x1c3   : > { %v721_v48 = vpop.trf.xlu1 }
 0x1c4   : > { %1880 = vmatmul.mubr.msk.f32.gmra.mrb[14].mxu1 %vm762_vm1, %v721_v48 }
 0x1c5   : > { %971 = vmatprep.mubr.f32.mxu1 %v3400_v1 }
 0x1c7   : > { %v722_v49 = vpop.trf.xlu1 }
 0x1c8   : > { %1881 = vmatmul.mubr.msk.f32.gmra.mrb[16].mxu1 %vm762_vm1, %v722_v49 }
 0x1c9   : > { %977 = vmatprep.mubr.f32.mxu1 %v3400_v1 }
 0x1cb   : > { %v723_v50 = vpop.trf.xlu1 }
 0x1cc   : > { %1882 = vmatmul.mubr.msk.f32.gmra.mrb[18].mxu1 %vm762_vm1, %v723_v50 }
 0x1cd   : > { %983 = vmatprep.mubr.f32.mxu1 %v3400_v1 }
 0x1cf   : > { %v724_v51 = vpop.trf.xlu1 }
 0x1d0   : > { %1883 = vmatmul.mubr.msk.f32.gmra.mrb[20].mxu1 %vm762_vm1, %v724_v51 }
 0x1d1   : > { %989 = vmatprep.mubr.f32.mxu1 %v3400_v1 }
 0x1d3   : > { %v725_v52 = vpop.trf.xlu1 }
 0x1d4   : > { %1884 = vmatmul.mubr.msk.f32.gmra.mrb[22].mxu1 %vm762_vm1, %v725_v52 }
 0x1d5   : > { %995 = vmatprep.mubr.f32.mxu1 %v3400_v1 }
 0x1d7   : > { %v726_v53 = vpop.trf.xlu1 }
 0x1d8   : > { %1885 = vmatmul.mubr.msk.f32.gmra.mrb[24].mxu1 %vm762_vm1, %v726_v53 }
 0x1d9   : > { %1001 = vmatprep.mubr.f32.mxu1 %v3400_v1 }
 0x1db   : > { %v727_v54 = vpop.trf.xlu1 }
 0x1dc   : > { %1886 = vmatmul.mubr.msk.f32.gmra.mrb[26].mxu1 %vm762_vm1, %v727_v54 }
 0x1dd   : > { %1007 = vmatprep.mubr.f32.mxu1 %v3400_v1 }
 0x1df   : > { %v728_v55 = vpop.trf.xlu1 }
 0x1e0   : > { %1887 = vmatmul.mubr.msk.f32.gmra.mrb[28].mxu1 %vm762_vm1, %v728_v55 }
 0x1e1   : > { %1013 = vmatprep.mubr.f32.mxu1 %v3400_v1 }
 0x1e3   : > { %v729_v56 = vpop.trf.xlu1 }
 0x1e4   : > { %1888 = vmatmul.mubr.msk.f32.gmra.mrb[30].mxu1 %vm762_vm1, %v729_v56 }
 0x1e5   : > { %1019 = vmatprep.mubr.f32.mxu1 %v3400_v1 }
 0x1e7   : > { %v746_v57 = vpop.trf.xlu1 }
 0x1e8   : > { %1889 = vmatmul.mubr.msk.f32.gmra.mrb[32].mxu1 %vm762_vm1, %v746_v57 }
 0x1e9   : > { %1025 = vmatprep.mubr.f32.mxu1 %v3400_v1 }
 0x1eb   : > { %v747_v58 = vpop.trf.xlu1 }
 0x1ec   : > { %1890 = vmatmul.mubr.msk.f32.gmra.mrb[34].mxu1 %vm762_vm1, %v747_v58 }
 0x1ed   : > { %1031 = vmatprep.mubr.f32.mxu1 %v3400_v1 }
 0x1ef   : > { %v748_v59 = vpop.trf.xlu1 }
 0x1f0   : > { %1891 = vmatmul.mubr.msk.f32.gmra.mrb[36].mxu1 %vm762_vm1, %v748_v59 }
 0x1f1   : > { %1037 = vmatprep.mubr.f32.mxu1 %v3400_v1 }
 0x1f3   : > { %v749_v60 = vpop.trf.xlu1 }
 0x1f4   : > { %1892 = vmatmul.mubr.msk.f32.gmra.mrb[38].mxu1 %vm762_vm1, %v749_v60 }
 0x1f5   : > { %1043 = vmatprep.mubr.f32.mxu1 %v3400_v1 }
 0x1f7   : > { %v750_v61 = vpop.trf.xlu1 }
 0x1f8   : > { %1893 = vmatmul.mubr.msk.f32.gmra.mrb[40].mxu1 %vm762_vm1, %v750_v61 }
 0x1f9   : > { %1049 = vmatprep.mubr.f32.mxu1 %v3400_v1 }
 0x1fb   : > { %v751_v62 = vpop.trf.xlu1 }
 0x1fc   : > { %1894 = vmatmul.mubr.msk.f32.gmra.mrb[42].mxu1 %vm762_vm1, %v751_v62 }
 0x1fd   : > { %1055 = vmatprep.mubr.f32.mxu1 %v3400_v1 }
 0x1ff   : > { %v752_v63 = vpop.trf.xlu1 }
 0x200   : > { %1895 = vmatmul.mubr.msk.f32.gmra.mrb[44].mxu1 %vm762_vm1, %v752_v63 }
 0x201   : > { %1061 = vmatprep.mubr.f32.mxu1 %v3400_v1 }
 0x203   : > { %v753_v0 = vpop.trf.xlu1 }
 0x204   : > { %1896 = vmatmul.mubr.msk.f32.gmra.mrb[46].mxu1 %vm762_vm1, %v753_v0 }
 0x205   : > { %1067 = vmatprep.mubr.f32.mxu1 %v3400_v1 }
 0x207   : > { %v754_v2 = vpop.trf.xlu1 }
 0x208   : > { %1897 = vmatmul.mubr.msk.f32.gmra.mrb[48].mxu1 %vm762_vm1, %v754_v2 }
 0x209   : > { %1073 = vmatprep.mubr.f32.mxu1 %v3400_v1 }
 0x20b   : > { %v755_v3 = vpop.trf.xlu1 }
 0x20c   : > { %1898 = vmatmul.mubr.msk.f32.gmra.mrb[50].mxu1 %vm762_vm1, %v755_v3 }
 0x20d   : > { %1079 = vmatprep.mubr.f32.mxu1 %v3400_v1 }
 0x20f   : > { %v756_v4 = vpop.trf.xlu1 }
 0x210   : > { %1899 = vmatmul.mubr.msk.f32.gmra.mrb[52].mxu1 %vm762_vm1, %v756_v4 }
 0x211   : > { %1085 = vmatprep.mubr.f32.mxu1 %v3400_v1 }
 0x213   : > { %v757_v5 = vpop.trf.xlu1 }
 0x214   : > { %1900 = vmatmul.mubr.msk.f32.gmra.mrb[54].mxu1 %vm762_vm1, %v757_v5 }
 0x215   : > { %1091 = vmatprep.mubr.f32.mxu1 %v3400_v1 }
 0x217   : > { %v758_v6 = vpop.trf.xlu1 }
 0x218   : > { %1901 = vmatmul.mubr.msk.f32.gmra.mrb[56].mxu1 %vm762_vm1, %v758_v6 }
 0x219   : > { %1097 = vmatprep.mubr.f32.mxu1 %v3400_v1 }
 0x21b   : > { %v759_v7 = vpop.trf.xlu1 }
 0x21c   : > { %1902 = vmatmul.mubr.msk.f32.gmra.mrb[58].mxu1 %vm762_vm1, %v759_v7 }
 0x21d   : > { %1103 = vmatprep.mubr.f32.mxu1 %v3400_v1 }
 0x21f   : > { %v760_v8 = vpop.trf.xlu1 }
 0x220   : > { %1903 = vmatmul.mubr.msk.f32.gmra.mrb[60].mxu1 %vm762_vm1, %v760_v8 }
 0x221   : > { %1109 = vmatprep.mubr.f32.mxu1 %v3400_v1 }
 0x223   : > { %v761_v9 = vpop.trf.xlu1 }
 0x224   : > { %1904 = vmatmul.mubr.msk.f32.gmra.mrb[62].mxu1 %vm762_vm1, %v761_v9 }
 0x27b   : > { %v2656_v10 = vpop.f32.mrb[0].mxu1 }
 0x27c   : > { %v2658_v11 = vpop.f32.mrb[1].mxu1 }
 0x27d   : > { %v1116_v12 = vmax.f32 %v2656_v10, %v2658_v11 }
 0x27f   : > { %1117 = vmax.xlane.f32.xlu0 %v1116_v12  ;;  %v2662_v13 = vpop.f32.mrb[2].mxu1 }
 0x280   : > { %v2664_v14 = vpop.f32.mrb[3].mxu1 }
 0x281   : > { %v1119_v15 = vmax.f32 %v2662_v13, %v2664_v14 }
 0x283   : > { %1120 = vmax.xlane.f32.xlu0 %v1119_v15  ;;  %v2668_v16 = vpop.f32.mrb[4].mxu1 }
 0x284   : > { %v2670_v17 = vpop.f32.mrb[5].mxu1 }
 0x285   : > { %v1122_v18 = vmax.f32 %v2668_v16, %v2670_v17 }
 0x287   : > { %1123 = vmax.xlane.f32.xlu0 %v1122_v18  ;;  %v2674_v19 = vpop.f32.mrb[6].mxu1 }
 0x288   : > { %v2676_v20 = vpop.f32.mrb[7].mxu1 }
 0x289   : > { %v1125_v21 = vmax.f32 %v2674_v19, %v2676_v20 }
 0x28b   : > { %1126 = vmax.xlane.f32.xlu0 %v1125_v21  ;;  %v2680_v22 = vpop.f32.mrb[8].mxu1 }
 0x28c   : > { %v2682_v23 = vpop.f32.mrb[9].mxu1 }
 0x28d   : > { %v1128_v24 = vmax.f32 %v2680_v22, %v2682_v23 }
 0x28f   : > { %1129 = vmax.xlane.f32.xlu0 %v1128_v24  ;;  %v2686_v25 = vpop.f32.mrb[10].mxu1 }
 0x290   : > { %v2688_v26 = vpop.f32.mrb[11].mxu1 }
 0x291   : > { %v1131_v27 = vmax.f32 %v2686_v25, %v2688_v26 }
 0x293   : > { %1132 = vmax.xlane.f32.xlu0 %v1131_v27  ;;  %v2692_v28 = vpop.f32.mrb[12].mxu1 }
 0x294   : > { %v2694_v29 = vpop.f32.mrb[13].mxu1 }
 0x295   : > { %v1134_v30 = vmax.f32 %v2692_v28, %v2694_v29 }
 0x297   : > { %1135 = vmax.xlane.f32.xlu0 %v1134_v30  ;;  %v2698_v31 = vpop.f32.mrb[14].mxu1 }
 0x298   : > { %v2700_v32 = vpop.f32.mrb[15].mxu1 }
 0x299   : > { %v1137_v33 = vmax.f32 %v2698_v31, %v2700_v32 }
 0x29b   : > { %1138 = vmax.xlane.f32.xlu0 %v1137_v33  ;;  %v2704_v34 = vpop.f32.mrb[16].mxu1 }
 0x29c   : > { %v2706_v35 = vpop.f32.mrb[17].mxu1 }
 0x29d   : > { %v1140_v36 = vmax.f32 %v2704_v34, %v2706_v35 }
 0x29f   : > { %1141 = vmax.xlane.f32.xlu1 %v1140_v36  ;;  %v2710_v37 = vpop.f32.mrb[18].mxu1 }
 0x2a0   : > { %v2712_v38 = vpop.f32.mrb[19].mxu1 }
 0x2a1   : > { %v1143_v39 = vmax.f32 %v2710_v37, %v2712_v38 }
 0x2a3   : > { %1144 = vmax.xlane.f32.xlu0 %v1143_v39  ;;  %v2716_v40 = vpop.f32.mrb[20].mxu1 }
 0x2a4   : > { %v2718_v41 = vpop.f32.mrb[21].mxu1 }
 0x2a5   : > { %v1146_v42 = vmax.f32 %v2716_v40, %v2718_v41 }
 0x2a7   : > { %1147 = vmax.xlane.f32.xlu0 %v1146_v42  ;;  %v2722_v43 = vpop.f32.mrb[22].mxu1 }
 0x2a8   : > { %v2724_v44 = vpop.f32.mrb[23].mxu1 }
 0x2a9   : > { %v1149_v45 = vmax.f32 %v2722_v43, %v2724_v44 }
 0x2ab   : > { %1150 = vmax.xlane.f32.xlu0 %v1149_v45  ;;  %v2728_v46 = vpop.f32.mrb[24].mxu1 }
 0x2ac   : > { %v2730_v47 = vpop.f32.mrb[25].mxu1 }
 0x2ad   : > { %v1152_v48 = vmax.f32 %v2728_v46, %v2730_v47 }
 0x2af   : > { %1153 = vmax.xlane.f32.xlu0 %v1152_v48  ;;  %v2734_v49 = vpop.f32.mrb[26].mxu1 }
 0x2b0   : > { %v2736_v50 = vpop.f32.mrb[27].mxu1 }
 0x2b1   : > { %v1155_v51 = vmax.f32 %v2734_v49, %v2736_v50 }
 0x2b3   : > { %1156 = vmax.xlane.f32.xlu0 %v1155_v51  ;;  %v2740_v52 = vpop.f32.mrb[28].mxu1 }
 0x2b4   : > { %v2742_v53 = vpop.f32.mrb[29].mxu1 }
 0x2b5   : > { %v1158_v54 = vmax.f32 %v2740_v52, %v2742_v53 }
 0x2b7   : > { %1159 = vmax.xlane.f32.xlu0 %v1158_v54  ;;  %v2746_v55 = vpop.f32.mrb[30].mxu1 }
 0x2b8   : > { %v2748_v56 = vpop.f32.mrb[31].mxu1 }
 0x2b9   : > { %v1161_v57 = vmax.f32 %v2746_v55, %v2748_v56 }
 0x2bb   : > { %1162 = vmax.xlane.f32.xlu0 %v1161_v57  ;;  %v2752_v58 = vpop.f32.mrb[32].mxu1 }
 0x2bc   : > { %v2754_v59 = vpop.f32.mrb[33].mxu1 }
 0x2bd   : > { %v1164_v60 = vmax.f32 %v2752_v58, %v2754_v59 }
 0x2bf   : > { %1165 = vmax.xlane.f32.xlu0 %v1164_v60  ;;  %v2758_v61 = vpop.f32.mrb[34].mxu1 }
 0x2c0   : > { %v2760_v62 = vpop.f32.mrb[35].mxu1 }
 0x2c1   : > { %v1167_v63 = vmax.f32 %v2758_v61, %v2760_v62 }
 0x2c3   : > { %1168 = vmax.xlane.f32.xlu0 %v1167_v63  ;;  %v2764_v0 = vpop.f32.mrb[36].mxu1  ;;  %v505_v63 = vld [vmem:[%s3395_s5] sm:$0xff] }
 0x2c4   : > { %v2766_v2 = vpop.f32.mrb[37].mxu1  ;;  %1865 = vmatmul.mubr.msk.f32.vlgmr.msra.gmra.mrb[4].mxu0 %vm349_vm0, %v505_v63 }
 0x2c5   : > { %v1170_v3 = vmax.f32 %v2764_v0, %v2766_v2  ;;  %655 = vmatprep.mubr.f32.mxu0 %v3400_v1 }
 0x2c7   : > { %1171 = vmax.xlane.f32.xlu0 %v1170_v3  ;;  %v2770_v4 = vpop.f32.mrb[38].mxu1 }
 0x2c8   : > { %v2772_v5 = vpop.f32.mrb[39].mxu1 }
 0x2c9   : > { %v1173_v6 = vmax.f32 %v2770_v4, %v2772_v5 }
 0x2cb   : > { %1174 = vmax.xlane.f32.xlu0 %v1173_v6  ;;  %v2776_v7 = vpop.f32.mrb[40].mxu1 }
 0x2cc   : > { %v2778_v8 = vpop.f32.mrb[41].mxu1 }
 0x2cd   : > { %v1176_v9 = vmax.f32 %v2776_v7, %v2778_v8 }
 0x2cf   : > { %1177 = vmax.xlane.f32.xlu0 %v1176_v9  ;;  %v2782_v12 = vpop.f32.mrb[42].mxu1 }
 0x2d0   : > { %v2784_v15 = vpop.f32.mrb[43].mxu1 }
 0x2d1   : > { %v1179_v18 = vmax.f32 %v2782_v12, %v2784_v15 }
 0x2d3   : > { %1180 = vmax.xlane.f32.xlu0 %v1179_v18  ;;  %v2788_v21 = vpop.f32.mrb[44].mxu1 }
 0x2d4   : > { %v2790_v24 = vpop.f32.mrb[45].mxu1 }
 0x2d5   : > { %v1182_v27 = vmax.f32 %v2788_v21, %v2790_v24 }
 0x2d7   : > { %1183 = vmax.xlane.f32.xlu0 %v1182_v27  ;;  %v2794_v30 = vpop.f32.mrb[46].mxu1 }
 0x2d8   : > { %v2796_v33 = vpop.f32.mrb[47].mxu1 }
 0x2d9   : > { %3433 = vst [vmem:[#allocation9_spill] sm:$0xff] %v2796_v33  ;;  %v1185_v36 = vmax.f32 %v2794_v30, %v2796_v33 }
 0x2db   : > { %1186 = vmax.xlane.f32.xlu0 %v1185_v36  ;;  %v2800_v39 = vpop.f32.mrb[48].mxu1 }
 0x2dc   : > { %3434 = vst [vmem:[#allocation10_spill] sm:$0xff] %v2800_v39  ;;  %v2802_v42 = vpop.f32.mrb[49].mxu1 }
 0x2dd   : > { %3435 = vst [vmem:[#allocation11_spill] sm:$0xff] %v2802_v42  ;;  %v1188_v45 = vmax.f32 %v2800_v39, %v2802_v42 }
 0x2df   : > { %1189 = vmax.xlane.f32.xlu0 %v1188_v45  ;;  %v2806_v48 = vpop.f32.mrb[50].mxu1 }
 0x2e0   : > { %3436 = vst [vmem:[#allocation12_spill] sm:$0xff] %v2806_v48  ;;  %v2808_v51 = vpop.f32.mrb[51].mxu1 }
 0x2e1   : > { %3437 = vst [vmem:[#allocation13_spill] sm:$0xff] %v2808_v51  ;;  %v1191_v54 = vmax.f32 %v2806_v48, %v2808_v51 }
 0x2e3   : > { %1192 = vmax.xlane.f32.xlu0 %v1191_v54  ;;  %v2812_v57 = vpop.f32.mrb[52].mxu1 }
 0x2e4   : > { %3438 = vst [vmem:[#allocation14_spill] sm:$0xff] %v2812_v57  ;;  %v2814_v60 = vpop.f32.mrb[53].mxu1 }
 0x2e5   : > { %3439 = vst [vmem:[#allocation15_spill] sm:$0xff] %v2814_v60  ;;  %v1194_v3 = vmax.f32 %v2812_v57, %v2814_v60 }
 0x2e7   : > { %1195 = vmax.xlane.f32.xlu0 %v1194_v3  ;;  %v2823_v6 = vpop.f32.mrb[54].mxu1  ;;  %v507_v3 = vld [vmem:[%s3395_s5 + $0x10] sm:$0xff] }
 0x2e8   : > { %3440 = vst [vmem:[#allocation16_spill] sm:$0xff] %v2823_v6  ;;  %v2825_v9 = vpop.f32.mrb[55].mxu1 }
 0x2e9   : > { %3441 = vst [vmem:[#allocation17_spill] sm:$0xff] %v2825_v9  ;;  %v1197_v18 = vmax.f32 %v2823_v6, %v2825_v9 }
 0x2eb   : > { %1198 = vmax.xlane.f32.xlu0 %v1197_v18  ;;  %v2829_v27 = vpop.f32.mrb[56].mxu1  ;;  %v506_v18 = vld [vmem:[%s3395_s5 + $0x8] sm:$0xff] }
 0x2ec   : > { %3442 = vst [vmem:[#allocation18_spill] sm:$0xff] %v2829_v27  ;;  %v2831_v36 = vpop.f32.mrb[57].mxu1  ;;  %1866 = vmatmul.mubr.msk.f32.gmra.mrb[6].mxu0 %vm349_vm0, %v506_v18  ;;  %v508_v18 = vld [vmem:[%s3395_s5 + $0x18] sm:$0xff] }
 0x2ed   : > { %3443 = vst [vmem:[#allocation19_spill] sm:$0xff] %v2831_v36  ;;  %v1200_v45 = vmax.f32 %v2829_v27, %v2831_v36 }
 0x2ef   : > { %1201 = vmax.xlane.f32.xlu1 %v1200_v45  ;;  %v2835_v54 = vpop.f32.mrb[58].mxu1  ;;  %v3446_v45 = vmov 0.0  }
 0x2f0   : > { %v2837_v63 = vpop.f32.mrb[59].mxu1  ;;  %661 = vmatprep.mubr.f32.mxu0 %v3446_v45 }
 0x2f1   : > { %1867 = vmatmul.mubr.msk.f32.gmra.mrb[8].mxu0 %vm349_vm0, %v507_v3  ;;  %v510_v3 = vld [vmem:[%s3395_s5 + $0x28] sm:$0xff] }
 0x2f2   : > { %667 = vmatprep.mubr.f32.mxu0 %v3446_v45 }
 0x2f3   : > { %v2841_v1 = vpop.f32.mrb[60].mxu1 }
 0x2f4   : > { %3444 = vst [vmem:[#allocation20_spill] sm:$0xff] %v2841_v1  ;;  %v2843_v60 = vpop.f32.mrb[61].mxu1 }
 0x2f5   : > { %3445 = vst [vmem:[#allocation21_spill] sm:$0xff] %v2843_v60  ;;  %v1206_v9 = vmax.f32 %v2841_v1, %v2843_v60  ;;  %1868 = vmatmul.mubr.msk.f32.gmra.mrb[10].mxu0 %vm349_vm0, %v508_v18  ;;  %v511_v18 = vld [vmem:[%s3395_s5 + $0x30] sm:$0xff] }
 0x2f6   : > { %673 = vmatprep.mubr.f32.mxu0 %v3446_v45 }
 0x2f7   : > { %1207 = vmax.xlane.f32.xlu1 %v1206_v9  ;;  %v2852_v36 = vpop.f32.mrb[62].mxu1  ;;  %v509_v9 = vld [vmem:[%s3395_s5 + $0x20] sm:$0xff] }
 0x2f8   : > { %v2854_v27 = vpop.f32.mrb[63].mxu1 }
 0x2f9   : > { %1869 = vmatmul.mubr.msk.f32.gmra.mrb[12].mxu0 %vm349_vm0, %v509_v9  ;;  %v512_v9 = vld [vmem:[%s3395_s5 + $0x38] sm:$0xff] }
 0x2fa   : > { %679 = vmatprep.mubr.f32.mxu0 %v3446_v45 }
 0x2fd   : > { %1870 = vmatmul.mubr.msk.f32.gmra.mrb[14].mxu0 %vm349_vm0, %v510_v3 }
 0x2fe   : > { %685 = vmatprep.mubr.f32.mxu0 %v3446_v45 }
 0x301   : > { %1871 = vmatmul.mubr.msk.f32.gmra.mrb[16].mxu0 %vm349_vm0, %v511_v18 }
 0x302   : > { %691 = vmatprep.mubr.f32.mxu0 %v3446_v45 }
 0x305   : > { %1872 = vmatmul.mubr.msk.f32.gmra.mrb[18].mxu0 %vm349_vm0, %v512_v9 }
 0x30c   : > { %v1118_v6 = vpop.xlane.xlu0 %1117 }
 0x30d   : > { %v1212_v60 = vsub.f32 %v2656_v10, %v1118_v6  ;;  %v1213_v1 = vsub.f32 %v2658_v11, %v1118_v6 }
 0x30f   : > { %v1276_v3 = vmul.f32 1.442695, %v1212_v60  ;;  %v1278_v57 = vmul.f32 1.442695, %v1213_v1 }
 0x310   : > { %v1121_v51 = vpop.xlane.xlu0 %1120 }
 0x311   : > { %2079 = vpow2.f32 %v1276_v3  ;;  %v1214_v48 = vsub.f32 %v2662_v13, %v1121_v51  ;;  %v1215_v18 = vsub.f32 %v2664_v14, %v1121_v51 }
 0x312   : > { %2081 = vpow2.f32 %v1278_v57 }
 0x313   : > { %v1280_v45 = vmul.f32 1.442695, %v1214_v48  ;;  %v1282_v42 = vmul.f32 1.442695, %v1215_v18 }
 0x314   : > { %v1124_v39 = vpop.xlane.xlu0 %1123 }
 0x315   : > { %2083 = vpow2.f32 %v1280_v45  ;;  %v1216_v33 = vsub.f32 %v2668_v16, %v1124_v39  ;;  %v1217_v10 = vsub.f32 %v2670_v17, %v1124_v39 }
 0x316   : > { %2085 = vpow2.f32 %v1282_v42 }
 0x317   : > { %v1284_v11 = vmul.f32 1.442695, %v1216_v33  ;;  %v1286_v6 = vmul.f32 1.442695, %v1217_v10 }
 0x318   : > { %v1127_v60 = vpop.xlane.xlu0 %1126 }
 0x319   : > { %2087 = vpow2.f32 %v1284_v11  ;;  %v1218_v1 = vsub.f32 %v2674_v19, %v1127_v60  ;;  %v1219_v13 = vsub.f32 %v2676_v20, %v1127_v60 }
 0x31a   : > { %2089 = vpow2.f32 %v1286_v6 }
 0x31b   : > { %v2895_v14 = vpop.eup %2079  ;;  %v1288_v48 = vmul.f32 1.442695, %v1218_v1  ;;  %v1290_v51 = vmul.f32 1.442695, %v1219_v13 }
 0x31c   : > { %v2897_v57 = vpop.eup %2081  ;;  %v1130_v9 = vpop.xlane.xlu0 %1129 }
 0x31d   : > { %2091 = vpow2.f32 %v1288_v48  ;;  %v1220_v16 = vsub.f32 %v2680_v22, %v1130_v9  ;;  %v1221_v17 = vsub.f32 %v2682_v23, %v1130_v9  ;;  %v1404_v33 = vadd.f32 %v2897_v57, %v2895_v14 }
 0x31e   : > { %2093 = vpow2.f32 %v1290_v51 }
 0x31f   : > { %v2903_v19 = vpop.eup %2083  ;;  %v1292_v20 = vmul.f32 1.442695, %v1220_v16  ;;  %v1294_v39 = vmul.f32 1.442695, %v1221_v17  ;;  %1405 = vadd.xlane.f32.xlu0 %v1404_v33 }
 0x320   : > { %v2905_v42 = vpop.eup %2085  ;;  %v1133_v3 = vpop.xlane.xlu0 %1132 }
 0x321   : > { %2095 = vpow2.f32 %v1292_v20  ;;  %v1222_v18 = vsub.f32 %v2686_v25, %v1133_v3  ;;  %v1223_v45 = vsub.f32 %v2688_v26, %v1133_v3  ;;  %v1407_v22 = vadd.f32 %v2905_v42, %v2903_v19 }
 0x322   : > { %2097 = vpow2.f32 %v1294_v39 }
 0x323   : > { %v2911_v23 = vpop.eup %2087  ;;  %v1296_v10 = vmul.f32 1.442695, %v1222_v18  ;;  %v1298_v11 = vmul.f32 1.442695, %v1223_v45  ;;  %1408 = vadd.xlane.f32.xlu0 %v1407_v22 }
 0x324   : > { %v2913_v6 = vpop.eup %2089  ;;  %v1136_v60 = vpop.xlane.xlu0 %1135 }
 0x325   : > { %2099 = vpow2.f32 %v1296_v10  ;;  %v1224_v1 = vsub.f32 %v2692_v28, %v1136_v60  ;;  %v1225_v13 = vsub.f32 %v2694_v29, %v1136_v60  ;;  %v1410_v25 = vadd.f32 %v2913_v6, %v2911_v23 }
 0x326   : > { %2101 = vpow2.f32 %v1298_v11 }
 0x327   : > { %v2919_v26 = vpop.eup %2091  ;;  %v1300_v48 = vmul.f32 1.442695, %v1224_v1  ;;  %v1302_v51 = vmul.f32 1.442695, %v1225_v13  ;;  %1411 = vadd.xlane.f32.xlu0 %v1410_v25 }
 0x328   : > { %v2921_v9 = vpop.eup %2093  ;;  %v1139_v16 = vpop.xlane.xlu0 %1138 }
 0x329   : > { %2103 = vpow2.f32 %v1300_v48  ;;  %v1226_v17 = vsub.f32 %v2698_v31, %v1139_v16  ;;  %v1227_v33 = vsub.f32 %v2700_v32, %v1139_v16  ;;  %v1413_v28 = vadd.f32 %v2921_v9, %v2919_v26 }
 0x32a   : > { %2105 = vpow2.f32 %v1302_v51 }
 0x32b   : > { %v2927_v29 = vpop.eup %2095  ;;  %v1304_v20 = vmul.f32 1.442695, %v1226_v17  ;;  %v1306_v39 = vmul.f32 1.442695, %v1227_v33  ;;  %1414 = vadd.xlane.f32.xlu0 %v1413_v28 }
 0x32c   : > { %v2929_v3 = vpop.eup %2097  ;;  %v1142_v18 = vpop.xlane.xlu1 %1141 }
 0x32d   : > { %2107 = vpow2.f32 %v1304_v20  ;;  %v1228_v45 = vsub.f32 %v2704_v34, %v1142_v18  ;;  %v1229_v22 = vsub.f32 %v2706_v35, %v1142_v18  ;;  %v1416_v31 = vadd.f32 %v2929_v3, %v2927_v29 }
 0x32e   : > { %2109 = vpow2.f32 %v1306_v39  ;;  %v3447_v18 = vmax.f32 %v2835_v54, %v2837_v63 }
 0x32f   : > { %v2935_v32 = vpop.eup %2099  ;;  %v1308_v10 = vmul.f32 1.442695, %v1228_v45  ;;  %v1310_v11 = vmul.f32 1.442695, %v1229_v22  ;;  %1417 = vadd.xlane.f32.xlu0 %v1416_v31 }
 0x330   : > { %v2937_v60 = vpop.eup %2101  ;;  %v1145_v1 = vpop.xlane.xlu0 %1144 }
 0x331   : > { %2111 = vpow2.f32 %v1308_v10  ;;  %v1230_v13 = vsub.f32 %v2710_v37, %v1145_v1  ;;  %v1231_v25 = vsub.f32 %v2712_v38, %v1145_v1  ;;  %v1419_v34 = vadd.f32 %v2937_v60, %v2935_v32 }
 0x332   : > { %2113 = vpow2.f32 %v1310_v11 }
 0x333   : > { %v2943_v35 = vpop.eup %2103  ;;  %v1312_v48 = vmul.f32 1.442695, %v1230_v13  ;;  %v1314_v51 = vmul.f32 1.442695, %v1231_v25  ;;  %1420 = vadd.xlane.f32.xlu0 %v1419_v34 }
 0x334   : > { %v2945_v16 = vpop.eup %2105  ;;  %v1148_v17 = vpop.xlane.xlu0 %1147 }
 0x335   : > { %2115 = vpow2.f32 %v1312_v48  ;;  %v1232_v33 = vsub.f32 %v2716_v40, %v1148_v17  ;;  %v1233_v28 = vsub.f32 %v2718_v41, %v1148_v17  ;;  %v1422_v37 = vadd.f32 %v2945_v16, %v2943_v35 }
 0x336   : > { %2117 = vpow2.f32 %v1314_v51 }
 0x337   : > { %v2951_v38 = vpop.eup %2107  ;;  %v1316_v20 = vmul.f32 1.442695, %v1232_v33  ;;  %v1318_v39 = vmul.f32 1.442695, %v1233_v28  ;;  %1204 = vmax.xlane.f32.xlu0 %v3447_v18  ;;  %1423 = vadd.xlane.f32.xlu1 %v1422_v37  ;;  %v3448_v33 = vmax.f32 %v2852_v36, %v2854_v27 }
 0x338   : > { %v2956_v45 = vpop.eup %2109  ;;  %v1151_v22 = vpop.xlane.xlu0 %1150 }
 0x339   : > { %2119 = vpow2.f32 %v1316_v20  ;;  %v1234_v40 = vsub.f32 %v2722_v43, %v1151_v22  ;;  %v1235_v41 = vsub.f32 %v2724_v44, %v1151_v22  ;;  %v1425_v31 = vadd.f32 %v2956_v45, %v2951_v38 }
 0x33a   : > { %2121 = vpow2.f32 %v1318_v39 }
 0x33b   : > { %v2962_v10 = vpop.eup %2111  ;;  %v1320_v11 = vmul.f32 1.442695, %v1234_v40  ;;  %v1322_v1 = vmul.f32 1.442695, %v1235_v41  ;;  %1426 = vadd.xlane.f32.xlu0 %v1425_v31 }
 0x33c   : > { %v2964_v13 = vpop.eup %2113  ;;  %v1154_v25 = vpop.xlane.xlu0 %1153 }
 0x33d   : > { %2123 = vpow2.f32 %v1320_v11  ;;  %v1236_v34 = vsub.f32 %v2728_v46, %v1154_v25  ;;  %v1237_v48 = vsub.f32 %v2730_v47, %v1154_v25  ;;  %v1428_v43 = vadd.f32 %v2964_v13, %v2962_v10 }
 0x33e   : > { %2125 = vpow2.f32 %v1322_v1 }
 0x33f   : > { %v2970_v44 = vpop.eup %2115  ;;  %v1324_v51 = vmul.f32 1.442695, %v1236_v34  ;;  %v1326_v17 = vmul.f32 1.442695, %v1237_v48  ;;  %1210 = vmax.xlane.f32.xlu0 %v3448_v33  ;;  %1429 = vadd.xlane.f32.xlu1 %v1428_v43 }
 0x340   : > { %v2975_v28 = vpop.eup %2117  ;;  %v1157_v37 = vpop.xlane.xlu0 %1156 }
 0x341   : > { %2127 = vpow2.f32 %v1324_v51  ;;  %v1238_v46 = vsub.f32 %v2734_v49, %v1157_v37  ;;  %v1239_v47 = vsub.f32 %v2736_v50, %v1157_v37  ;;  %v1431_v20 = vadd.f32 %v2975_v28, %v2970_v44 }
 0x342   : > { %2129 = vpow2.f32 %v1326_v17 }
 0x343   : > { %v2981_v39 = vpop.eup %2119  ;;  %v1328_v18 = vmul.f32 1.442695, %v1238_v46  ;;  %v1330_v22 = vmul.f32 1.442695, %v1239_v47  ;;  %1432 = vadd.xlane.f32.xlu0 %v1431_v20 }
 0x344   : > { %v2983_v40 = vpop.eup %2121  ;;  %v1160_v41 = vpop.xlane.xlu0 %1159 }
 0x345   : > { %2131 = vpow2.f32 %v1328_v18  ;;  %v1240_v31 = vsub.f32 %v2740_v52, %v1160_v41  ;;  %v1241_v11 = vsub.f32 %v2742_v53, %v1160_v41  ;;  %v1434_v49 = vadd.f32 %v2983_v40, %v2981_v39 }
 0x346   : > { %2133 = vpow2.f32 %v1330_v22 }
 0x347   : > { %v2989_v50 = vpop.eup %2123  ;;  %v1332_v1 = vmul.f32 1.442695, %v1240_v31  ;;  %v1334_v25 = vmul.f32 1.442695, %v1241_v11  ;;  %1435 = vadd.xlane.f32.xlu1 %v1434_v49 }
 0x348   : > { %v2991_v34 = vpop.eup %2125  ;;  %v1163_v48 = vpop.xlane.xlu0 %1162 }
 0x349   : > { %2135 = vpow2.f32 %v1332_v1  ;;  %v1242_v43 = vsub.f32 %v2746_v55, %v1163_v48  ;;  %v1243_v51 = vsub.f32 %v2748_v56, %v1163_v48  ;;  %v1437_v52 = vadd.f32 %v2991_v34, %v2989_v50 }
 0x34a   : > { %2137 = vpow2.f32 %v1334_v25 }
 0x34b   : > { %v2997_v53 = vpop.eup %2127  ;;  %v1336_v17 = vmul.f32 1.442695, %v1242_v43  ;;  %v1338_v33 = vmul.f32 1.442695, %v1243_v51  ;;  %1438 = vadd.xlane.f32.xlu0 %v1437_v52 }
 0x34c   : > { %v2999_v37 = vpop.eup %2129  ;;  %v1166_v46 = vpop.xlane.xlu0 %1165 }
 0x34d   : > { %2139 = vpow2.f32 %v1336_v17  ;;  %v1244_v47 = vsub.f32 %v2752_v58, %v1166_v46  ;;  %v1245_v20 = vsub.f32 %v2754_v59, %v1166_v46  ;;  %v1440_v55 = vadd.f32 %v2999_v37, %v2997_v53 }
 0x34e   : > { %2141 = vpow2.f32 %v1338_v33 }
 0x34f   : > { %v3005_v56 = vpop.eup %2131  ;;  %v1340_v18 = vmul.f32 1.442695, %v1244_v47  ;;  %v1342_v22 = vmul.f32 1.442695, %v1245_v20  ;;  %1441 = vadd.xlane.f32.xlu1 %v1440_v55 }
 0x350   : > { %v3007_v41 = vpop.eup %2133  ;;  %v1169_v31 = vpop.xlane.xlu0 %1168 }
 0x351   : > { %2143 = vpow2.f32 %v1340_v18  ;;  %v1246_v11 = vsub.f32 %v2758_v61, %v1169_v31  ;;  %v1247_v49 = vsub.f32 %v2760_v62, %v1169_v31  ;;  %v1443_v58 = vadd.f32 %v3007_v41, %v3005_v56 }
 0x352   : > { %2145 = vpow2.f32 %v1342_v22 }
 0x353   : > { %v3013_v59 = vpop.eup %2135  ;;  %v1344_v1 = vmul.f32 1.442695, %v1246_v11  ;;  %v1346_v25 = vmul.f32 1.442695, %v1247_v49  ;;  %1444 = vadd.xlane.f32.xlu0 %v1443_v58 }
 0x354   : > { %v3015_v48 = vpop.eup %2137  ;;  %v1172_v43 = vpop.xlane.xlu0 %1171 }
 0x355   : > { %2147 = vpow2.f32 %v1344_v1  ;;  %v1248_v51 = vsub.f32 %v2764_v0, %v1172_v43  ;;  %v1249_v52 = vsub.f32 %v2766_v2, %v1172_v43  ;;  %v1446_v61 = vadd.f32 %v3015_v48, %v3013_v59 }
 0x356   : > { %2149 = vpow2.f32 %v1346_v25 }
 0x357   : > { %v3021_v62 = vpop.eup %2139  ;;  %v1348_v17 = vmul.f32 1.442695, %v1248_v51  ;;  %v1350_v33 = vmul.f32 1.442695, %v1249_v52  ;;  %1447 = vadd.xlane.f32.xlu1 %v1446_v61 }
 0x358   : > { %v3023_v46 = vpop.eup %2141  ;;  %v1175_v47 = vpop.xlane.xlu0 %1174 }
 0x359   : > { %2151 = vpow2.f32 %v1348_v17  ;;  %v1250_v20 = vsub.f32 %v2770_v4, %v1175_v47  ;;  %v1251_v55 = vsub.f32 %v2772_v5, %v1175_v47  ;;  %v1449_v0 = vadd.f32 %v3023_v46, %v3021_v62 }
 0x35a   : > { %2153 = vpow2.f32 %v1350_v33 }
 0x35b   : > { %v3029_v2 = vpop.eup %2143  ;;  %v1352_v18 = vmul.f32 1.442695, %v1250_v20  ;;  %v1354_v22 = vmul.f32 1.442695, %v1251_v55  ;;  %1450 = vadd.xlane.f32.xlu0 %v1449_v0 }
 0x35c   : > { %v3031_v31 = vpop.eup %2145  ;;  %v1178_v11 = vpop.xlane.xlu0 %1177 }
 0x35d   : > { %2155 = vpow2.f32 %v1352_v18  ;;  %v1252_v49 = vsub.f32 %v2776_v7, %v1178_v11  ;;  %v1253_v58 = vsub.f32 %v2778_v8, %v1178_v11  ;;  %v1452_v4 = vadd.f32 %v3031_v31, %v3029_v2 }
 0x35e   : > { %2157 = vpow2.f32 %v1354_v22 }
 0x35f   : > { %v3037_v5 = vpop.eup %2147  ;;  %v1356_v1 = vmul.f32 1.442695, %v1252_v49  ;;  %v1358_v25 = vmul.f32 1.442695, %v1253_v58  ;;  %1453 = vadd.xlane.f32.xlu1 %v1452_v4  ;;  %v3449_v4 = vld [vmem:[#allocation9_spill] sm:$0xff] }
 0x360   : > { %v3039_v43 = vpop.eup %2149  ;;  %v1181_v51 = vpop.xlane.xlu0 %1180 }
 0x361   : > { %2159 = vpow2.f32 %v1356_v1  ;;  %v1254_v52 = vsub.f32 %v2782_v12, %v1181_v51  ;;  %v1255_v61 = vsub.f32 %v2784_v15, %v1181_v51  ;;  %v1455_v7 = vadd.f32 %v3039_v43, %v3037_v5 }
 0x362   : > { %2161 = vpow2.f32 %v1358_v25 }
 0x363   : > { %v3045_v8 = vpop.eup %2151  ;;  %v1360_v17 = vmul.f32 1.442695, %v1254_v52  ;;  %v1362_v33 = vmul.f32 1.442695, %v1255_v61  ;;  %1456 = vadd.xlane.f32.xlu0 %v1455_v7  ;;  %v3451_v7 = vld [vmem:[#allocation10_spill] sm:$0xff] }
 0x364   : > { %v3047_v47 = vpop.eup %2153  ;;  %v1184_v20 = vpop.xlane.xlu0 %1183 }
 0x365   : > { %2163 = vpow2.f32 %v1360_v17  ;;  %v1256_v55 = vsub.f32 %v2788_v21, %v1184_v20  ;;  %v1257_v0 = vsub.f32 %v2790_v24, %v1184_v20  ;;  %v1458_v12 = vadd.f32 %v3047_v47, %v3045_v8 }
 0x366   : > { %2165 = vpow2.f32 %v1362_v33  ;;  %v3452_v33 = vld [vmem:[#allocation11_spill] sm:$0xff] }
 0x367   : > { %v3053_v15 = vpop.eup %2155  ;;  %v1364_v18 = vmul.f32 1.442695, %v1256_v55  ;;  %v1366_v22 = vmul.f32 1.442695, %v1257_v0  ;;  %1459 = vadd.xlane.f32.xlu1 %v1458_v12 }
 0x368   : > { %v3055_v11 = vpop.eup %2157  ;;  %v1187_v49 = vpop.xlane.xlu0 %1186 }
 0x369   : > { %2167 = vpow2.f32 %v1364_v18  ;;  %v1258_v58 = vsub.f32 %v2794_v30, %v1187_v49  ;;  %v1259_v1 = vsub.f32 %v3449_v4, %v1187_v49  ;;  %v1461_v21 = vadd.f32 %v3055_v11, %v3053_v15  ;;  %v3454_v49 = vld [vmem:[#allocation12_spill] sm:$0xff]  ;;  %v3455_v4 = vld [vmem:[#allocation13_spill] sm:$0xff] }
 0x36a   : > { %2169 = vpow2.f32 %v1366_v22 }
 0x36b   : > { %v3061_v24 = vpop.eup %2159  ;;  %v1368_v25 = vmul.f32 1.442695, %v1258_v58  ;;  %v1370_v51 = vmul.f32 1.442695, %v1259_v1  ;;  %1462 = vadd.xlane.f32.xlu0 %v1461_v21 }
 0x36c   : > { %3450 = vst [vmem:[#allocation9_spill] sm:$0xff] %v3061_v24  ;;  %v3063_v52 = vpop.eup %2161  ;;  %v1190_v61 = vpop.xlane.xlu0 %1189 }
 0x36d   : > { %2171 = vpow2.f32 %v1368_v25  ;;  %v1260_v17 = vsub.f32 %v3451_v7, %v1190_v61  ;;  %v1261_v20 = vsub.f32 %v3452_v33, %v1190_v61  ;;  %v1464_v30 = vadd.f32 %v3063_v52, %v3061_v24  ;;  %v3458_v33 = vld [vmem:[#allocation14_spill] sm:$0xff] }
 0x36e   : > { %2173 = vpow2.f32 %v1370_v51 }
 0x36f   : > { %v3069_v55 = vpop.eup %2163  ;;  %v1372_v0 = vmul.f32 1.442695, %v1260_v17  ;;  %v1374_v12 = vmul.f32 1.442695, %v1261_v20  ;;  %1465 = vadd.xlane.f32.xlu1 %v1464_v30  ;;  %v3459_v30 = vld [vmem:[#allocation15_spill] sm:$0xff] }
 0x370   : > { %3453 = vst [vmem:[#allocation10_spill] sm:$0xff] %v3069_v55  ;;  %v3071_v18 = vpop.eup %2165  ;;  %v1193_v22 = vpop.xlane.xlu0 %1192 }
 0x371   : > { %2175 = vpow2.f32 %v1372_v0  ;;  %v1262_v58 = vsub.f32 %v3454_v49, %v1193_v22  ;;  %v1263_v1 = vsub.f32 %v3455_v4, %v1193_v22  ;;  %v1467_v21 = vadd.f32 %v3071_v18, %v3069_v55 }
 0x372   : > { %2177 = vpow2.f32 %v1374_v12 }
 0x373   : > { %v3077_v25 = vpop.eup %2167  ;;  %v1376_v51 = vmul.f32 1.442695, %v1262_v58  ;;  %v1378_v61 = vmul.f32 1.442695, %v1263_v1  ;;  %1468 = vadd.xlane.f32.xlu0 %v1467_v21  ;;  %v3460_v21 = vld [vmem:[#allocation16_spill] sm:$0xff] }
 0x374   : > { %3456 = vst [vmem:[#allocation11_spill] sm:$0xff] %v3077_v25  ;;  %v3079_v7 = vpop.eup %2169  ;;  %v1196_v17 = vpop.xlane.xlu0 %1195 }
 0x375   : > { %3457 = vst [vmem:[#allocation12_spill] sm:$0xff] %v3079_v7  ;;  %2179 = vpow2.f32 %v1376_v51  ;;  %v1264_v20 = vsub.f32 %v3458_v33, %v1196_v17  ;;  %v1265_v0 = vsub.f32 %v3459_v30, %v1196_v17  ;;  %v1470_v22 = vadd.f32 %v3079_v7, %v3077_v25  ;;  %v3461_v51 = vld [vmem:[#allocation17_spill] sm:$0xff] }
 0x376   : > { %2181 = vpow2.f32 %v1378_v61 }
 0x377   : > { %v3085_v49 = vpop.eup %2171  ;;  %v1380_v12 = vmul.f32 1.442695, %v1264_v20  ;;  %v1382_v4 = vmul.f32 1.442695, %v1265_v0  ;;  %1471 = vadd.xlane.f32.xlu1 %v1470_v22  ;;  %v3463_v22 = vld [vmem:[#allocation18_spill] sm:$0xff] }
 0x378   : > { %v3087_v58 = vpop.eup %2173  ;;  %v1199_v1 = vpop.xlane.xlu0 %1198 }
 0x379   : > { %2183 = vpow2.f32 %v1380_v12  ;;  %v1266_v24 = vsub.f32 %v3460_v21, %v1199_v1  ;;  %v1267_v55 = vsub.f32 %v3461_v51, %v1199_v1  ;;  %v1473_v17 = vadd.f32 %v3087_v58, %v3085_v49  ;;  %v3464_v12 = vld [vmem:[#allocation19_spill] sm:$0xff] }
 0x37a   : > { %2185 = vpow2.f32 %v1382_v4 }
 0x37b   : > { %v3093_v33 = vpop.eup %2175  ;;  %v1384_v61 = vmul.f32 1.442695, %v1266_v24  ;;  %v1386_v30 = vmul.f32 1.442695, %v1267_v55  ;;  %1474 = vadd.xlane.f32.xlu0 %v1473_v17 }
 0x37c   : > { %3462 = vst [vmem:[#allocation13_spill] sm:$0xff] %v3093_v33  ;;  %v3095_v20 = vpop.eup %2177  ;;  %v1202_v0 = vpop.xlane.xlu1 %1201 }
 0x37d   : > { %2187 = vpow2.f32 %v1384_v61  ;;  %v1268_v25 = vsub.f32 %v3463_v22, %v1202_v0  ;;  %v1269_v7 = vsub.f32 %v3464_v12, %v1202_v0  ;;  %v1476_v1 = vadd.f32 %v3095_v20, %v3093_v33 }
 0x37e   : > { %2189 = vpow2.f32 %v1386_v30 }
 0x37f   : > { %v3101_v21 = vpop.eup %2179  ;;  %v1388_v4 = vmul.f32 1.442695, %v1268_v25  ;;  %v1390_v51 = vmul.f32 1.442695, %v1269_v7  ;;  %1477 = vadd.xlane.f32.xlu1 %v1476_v1 }
 0x380   : > { %3465 = vst [vmem:[#allocation14_spill] sm:$0xff] %v3101_v21  ;;  %v3103_v24 = vpop.eup %2181 }
 0x381   : > { %3466 = vst [vmem:[#allocation15_spill] sm:$0xff] %v3103_v24  ;;  %2191 = vpow2.f32 %v1388_v4  ;;  %v1479_v55 = vadd.f32 %v3103_v24, %v3101_v21  ;;  %v513_v4 = vld [vmem:[%s3396_s6] sm:$0xff] }
 0x382   : > { %2193 = vpow2.f32 %v1390_v51 }
 0x383   : > { %v3107_v17 = vpop.eup %2183  ;;  %1480 = vadd.xlane.f32.xlu0 %v1479_v55  ;;  %v3473_v55 = vld [vmem:[#allocation20_spill] sm:$0xff] }
 0x384   : > { %3467 = vst [vmem:[#allocation16_spill] sm:$0xff] %v3107_v17  ;;  %v3109_v61 = vpop.eup %2185  ;;  %v1208_v51 = vpop.xlane.xlu1 %1207 }
 0x385   : > { %3468 = vst [vmem:[#allocation17_spill] sm:$0xff] %v3109_v61  ;;  %v1482_v30 = vadd.f32 %v3109_v61, %v3107_v17  ;;  %v3474_v61 = vld [vmem:[#allocation21_spill] sm:$0xff] }
 0x387   : > { %v3113_v0 = vpop.eup %2187  ;;  %1483 = vadd.xlane.f32.xlu1 %v1482_v30  ;;  %v1272_v30 = vsub.f32 %v3473_v55, %v1208_v51 }
 0x388   : > { %3469 = vst [vmem:[#allocation18_spill] sm:$0xff] %v3113_v0  ;;  %v3115_v25 = vpop.eup %2189 }
 0x389   : > { %3470 = vst [vmem:[#allocation19_spill] sm:$0xff] %v3115_v25  ;;  %v1485_v7 = vadd.f32 %v3115_v25, %v3113_v0  ;;  %v1273_v0 = vsub.f32 %v3474_v61, %v1208_v51  ;;  %v1396_v25 = vmul.f32 1.442695, %v1272_v30 }
 0x38b   : > { %v3119_v22 = vpop.eup %2191  ;;  %1486 = vadd.xlane.f32.xlu0 %v1485_v7  ;;  %v1398_v33 = vmul.f32 1.442695, %v1273_v0 }
 0x38c   : > { %3471 = vst [vmem:[#allocation22_spill] sm:$0xff] %v3119_v22  ;;  %v3121_v12 = vpop.eup %2193 }
 0x38d   : > { %3472 = vst [vmem:[#allocation23_spill] sm:$0xff] %v3121_v12  ;;  %v1488_v1 = vadd.f32 %v3121_v12, %v3119_v22 }
 0x38f   : > { %1489 = vadd.xlane.f32.xlu1 %v1488_v1 }
 0x397   : > { %v3130_v22 = vpop.f32.mrb[4].mxu0 }
 0x3a0   : > { %523 = vperm.xlu1 %2078, %v513_v4   ;;  %v3132_v4 = vpop.f32.mrb[5].mxu0 }
 0x3a1   : > { %3475 = vst [vmem:[#allocation20_spill] sm:$0xff] %v3132_v4 }
 0x3ac   : > { %v1406_v17 = vpop.xlane.xlu0 %1405 }
 0x3ad   : > { %2195 = vrcp.f32 %v1406_v17 }
 0x3b0   : > { %v1409_v7 = vpop.xlane.xlu0 %1408 }
 0x3b1   : > { %2197 = vrcp.f32 %v1409_v7 }
 0x3b2   : > { %2199 = vpow2.f32 %v1396_v25 }
 0x3b3   : > { %2201 = vpow2.f32 %v1398_v33 }
 0x3b4   : > { %v1412_v21 = vpop.xlane.xlu0 %1411 }
 0x3b5   : > { %2203 = vrcp.f32 %v1412_v21 }
 0x3b7   : > { %v2196_v12 = vpop.eup %2195 }
 0x3b8   : > { %v1415_v1 = vpop.xlane.xlu0 %1414  ;;  %v1502_v61 = vmul.f32 %v2196_v12, %v2897_v57  ;;  %v1501_v0 = vmul.f32 %v2196_v12, %v2895_v14 }
 0x3b9   : > { %2205 = vrcp.f32 %v1415_v1 }
 0x3bb   : > { %v2198_v55 = vpop.eup %2197 }
 0x3bc   : > { %v1418_v24 = vpop.xlane.xlu0 %1417  ;;  %v1505_v17 = vmul.f32 %v2198_v55, %v2905_v42  ;;  %v1504_v25 = vmul.f32 %v2198_v55, %v2903_v19  ;;  %v3138_v51 = vpop.eup %2199 }
 0x3bd   : > { %v3140_v30 = vpop.eup %2201  ;;  %2207 = vrcp.f32 %v1418_v24 }
 0x3be   : > { %v1961_v33 = vpack.c.bf16 %v1505_v17, %v1502_v61  ;;  %v1963_v21 = vpack.c.bf16 %v1504_v25, %v1501_v0  ;;  %v1494_v57 = vadd.f32 %v3140_v30, %v3138_v51 }
 0x3bf   : > { %v2204_v1 = vpop.eup %2203 }
 0x3c0   : > { %1962 = vmatprep.subr.bf16.mxu1 %v1961_v33  ;;  %v1421_v7 = vpop.xlane.xlu0 %1420  ;;  %v1508_v14 = vmul.f32 %v2204_v1, %v2913_v6  ;;  %v1507_v12 = vmul.f32 %v2204_v1, %v2911_v23 }
 0x3c1   : > { %2209 = vrcp.f32 %v1421_v7  ;;  %1964 = vmatpush1.bf16.xpose.msra.mxu1 %v1963_v21 }
 0x3c3   : > { %v2206_v42 = vpop.eup %2205 }
 0x3c4   : > { %v1205_v4 = vpop.xlane.xlu0 %1204  ;;  %1495 = vadd.xlane.f32.xlu1 %v1494_v57  ;;  %v1511_v19 = vmul.f32 %v2206_v42, %v2921_v9  ;;  %v1510_v55 = vmul.f32 %v2206_v42, %v2919_v26  ;;  %v1424_v17 = vpop.xlane.xlu1 %1423 }
 0x3c5   : > { %v1270_v24 = vsub.f32 %v2835_v54, %v1205_v4  ;;  %v1271_v61 = vsub.f32 %v2837_v63, %v1205_v4  ;;  %2211 = vrcp.f32 %v1424_v17 }
 0x3c6   : > { %v1965_v0 = vpack.c.bf16 %v1511_v19, %v1508_v14  ;;  %v1967_v25 = vpack.c.bf16 %v1510_v55, %v1507_v12 }
 0x3c7   : > { %v1392_v33 = vmul.f32 1.442695, %v1270_v24  ;;  %v1394_v21 = vmul.f32 1.442695, %v1271_v61  ;;  %v2208_v57 = vpop.eup %2207 }
 0x3c8   : > { %1966 = vmatprep.subr.bf16.mxu1 %v1965_v0  ;;  %v1427_v7 = vpop.xlane.xlu0 %1426  ;;  %v1514_v26 = vmul.f32 %v2208_v57, %v2929_v3  ;;  %v1513_v63 = vmul.f32 %v2208_v57, %v2927_v29  ;;  %v515_v29 = vld [vmem:[%s3396_s6 + $0x10] sm:$0xff]  ;;  %v516_v57 = vld [vmem:[%s3396_s6 + $0x18] sm:$0xff] }
 0x3c9   : > { %2213 = vpow2.f32 %v1392_v33  ;;  %1968 = vmatpush1.bf16.xpose.msra.mxu1 %v1967_v25 }
 0x3ca   : > { %2215 = vpow2.f32 %v1394_v21 }
 0x3cb   : > { %v2210_v6 = vpop.eup %2209  ;;  %2217 = vrcp.f32 %v1427_v7 }
 0x3cc   : > { %v1211_v23 = vpop.xlane.xlu0 %1210  ;;  %v1517_v54 = vmul.f32 %v2210_v6, %v2937_v60  ;;  %v1516_v9 = vmul.f32 %v2210_v6, %v2935_v32  ;;  %v1430_v42 = vpop.xlane.xlu1 %1429 }
 0x3cd   : > { %v1274_v4 = vsub.f32 %v2852_v36, %v1211_v23  ;;  %v1275_v1 = vsub.f32 %v2854_v27, %v1211_v23  ;;  %2219 = vrcp.f32 %v1430_v42  ;;  %v3159_v32 = vpop.f32.mrb[6].mxu0 }
 0x3ce   : > { %v1969_v14 = vpack.c.bf16 %v1517_v54, %v1514_v26  ;;  %v1971_v19 = vpack.c.bf16 %v1516_v9, %v1513_v63  ;;  %v3163_v27 = vpop.f32.mrb[7].mxu0 }
 0x3cf   : > { %v1400_v12 = vmul.f32 1.442695, %v1274_v4  ;;  %v1402_v55 = vmul.f32 1.442695, %v1275_v1  ;;  %v2212_v3 = vpop.eup %2211  ;;  %v3167_v17 = vpop.f32.mrb[8].mxu0 }
 0x3d0   : > { %1970 = vmatprep.subr.bf16.mxu1 %v1969_v14  ;;  %v1433_v24 = vpop.xlane.xlu0 %1432  ;;  %v3171_v33 = vpop.f32.mrb[9].mxu0  ;;  %v1520_v21 = vmul.f32 %v2212_v3, %v2945_v16  ;;  %v1519_v6 = vmul.f32 %v2212_v3, %v2943_v35 }
 0x3d1   : > { %2221 = vpow2.f32 %v1400_v12  ;;  %1972 = vmatpush1.bf16.xpose.msra.mxu1 %v1971_v19  ;;  %v3180_v26 = vpop.f32.mrb[10].mxu0 }
 0x3d2   : > { %2223 = vpow2.f32 %v1402_v55  ;;  %v3182_v54 = vpop.f32.mrb[11].mxu0 }
 0x3d3   : > { %v3161_v36 = vpop.eup %2213  ;;  %2225 = vrcp.f32 %v1433_v24  ;;  %v3187_v35 = vpop.f32.mrb[12].mxu0 }
 0x3d4   : > { %v3165_v60 = vpop.eup %2215  ;;  %v1436_v61 = vpop.xlane.xlu1 %1435 }
 0x3d5   : > { %v2218_v0 = vpop.eup %2217  ;;  %533 = vperm.xlu1 %2078, %v515_v29   ;;  %v1491_v25 = vadd.f32 %v3165_v60, %v3161_v36  ;;  %2227 = vrcp.f32 %v1436_v61  ;;  %v3191_v1 = vpop.f32.mrb[13].mxu0  ;;  %v520_v61 = vld [vmem:[%s3396_s6 + $0x38] sm:$0xff] }
 0x3d6   : > { %v1523_v7 = vmul.f32 %v2218_v0, %v2956_v45  ;;  %v1522_v23 = vmul.f32 %v2218_v0, %v2951_v38  ;;  %v518_v45 = vld [vmem:[%s3396_s6 + $0x28] sm:$0xff]  ;;  %v3195_v19 = vpop.f32.mrb[14].mxu0 }
 0x3d7   : > { %1492 = vadd.xlane.f32.xlu0 %v1491_v25  ;;  %v2220_v16 = vpop.eup %2219  ;;  %v3199_v24 = vpop.f32.mrb[15].mxu0 }
 0x3d8   : > { %v1439_v63 = vpop.xlane.xlu0 %1438  ;;  %v1973_v9 = vpack.c.bf16 %v1523_v7, %v1520_v21  ;;  %v1975_v4 = vpack.c.bf16 %v1522_v23, %v1519_v6  ;;  %v1526_v3 = vmul.f32 %v2220_v16, %v2964_v13  ;;  %v1525_v0 = vmul.f32 %v2220_v16, %v2962_v10  ;;  %v3208_v21 = vpop.f32.mrb[16].mxu0 }
 0x3d9   : > { %2229 = vrcp.f32 %v1439_v63  ;;  %538 = vperm.xlu1 %2078, %v516_v57   ;;  %v3210_v7 = vpop.f32.mrb[17].mxu0 }
 0x3da   : > { %1974 = vmatprep.subr.bf16.mxu1 %v1973_v9  ;;  %v3212_v13 = vpop.f32.mrb[18].mxu0 }
 0x3db   : > { %v3189_v38 = vpop.eup %2221  ;;  %1976 = vmatpush1.bf16.xpose.msra.mxu1 %v1975_v4  ;;  %v3214_v63 = vpop.f32.mrb[19].mxu0 }
 0x3dc   : > { %v3193_v42 = vpop.eup %2223  ;;  %v1442_v14 = vpop.xlane.xlu1 %1441 }
 0x3dd   : > { %v2226_v12 = vpop.eup %2225  ;;  %548 = vperm.xlu1 %2078, %v518_v45   ;;  %v1497_v55 = vadd.f32 %v3193_v42, %v3189_v38  ;;  %2231 = vrcp.f32 %v1442_v14 }
 0x3de   : > { %v1529_v29 = vmul.f32 %v2226_v12, %v2975_v28  ;;  %v1528_v25 = vmul.f32 %v2226_v12, %v2970_v44 }
 0x3df   : > { %1498 = vadd.xlane.f32.xlu0 %v1497_v55  ;;  %v2228_v28 = vpop.eup %2227 }
 0x3e0   : > { %v1445_v57 = vpop.xlane.xlu0 %1444  ;;  %v1977_v6 = vpack.c.bf16 %v1529_v29, %v1526_v3  ;;  %v1979_v23 = vpack.c.bf16 %v1528_v25, %v1525_v0  ;;  %v1532_v9 = vmul.f32 %v2228_v28, %v2983_v40  ;;  %v1531_v45 = vmul.f32 %v2228_v28, %v2981_v39 }
 0x3e1   : > { %2233 = vrcp.f32 %v1445_v57  ;;  %558 = vperm.xlu1 %2078, %v520_v61  }
 0x3e2   : > { %1978 = vmatprep.subr.bf16.mxu1 %v1977_v6 }
 0x3e3   : > { %v2230_v10 = vpop.eup %2229  ;;  %1980 = vmatpush1.bf16.xpose.msra.mxu1 %v1979_v23  ;;  %v514_v23 = vld [vmem:[%s3396_s6 + $0x8] sm:$0xff] }
 0x3e4   : > { %v1448_v44 = vpop.xlane.xlu1 %1447  ;;  %v1535_v4 = vmul.f32 %v2230_v10, %v2991_v34  ;;  %v1534_v16 = vmul.f32 %v2230_v10, %v2989_v50 }
 0x3e5   : > { %2235 = vrcp.f32 %v1448_v44  ;;  %v517_v44 = vld [vmem:[%s3396_s6 + $0x20] sm:$0xff] }
 0x3e6   : > { %v1981_v14 = vpack.c.bf16 %v1535_v4, %v1532_v9  ;;  %v1983_v12 = vpack.c.bf16 %v1534_v16, %v1531_v45 }
 0x3e7   : > { %v2232_v3 = vpop.eup %2231 }
 0x3e8   : > { %v1451_v55 = vpop.xlane.xlu0 %1450  ;;  %1982 = vmatprep.subr.bf16.mxu1 %v1981_v14  ;;  %v1538_v0 = vmul.f32 %v2232_v3, %v2999_v37  ;;  %v1537_v50 = vmul.f32 %v2232_v3, %v2997_v53  ;;  %v1905_v3 = vld [vmem:[#allocation2] ss:$0 sm:$0xff] }
 0x3e9   : > { %2237 = vrcp.f32 %v1451_v55 }
 0x3eb   : > { %v2234_v29 = vpop.eup %2233  ;;  %1984 = vmatpush1.bf16.xpose.msra.mxu1 %v1983_v12 }
 0x3ec   : > { %v1454_v61 = vpop.xlane.xlu1 %1453  ;;  %v1541_v40 = vmul.f32 %v2234_v29, %v3007_v41  ;;  %v1540_v34 = vmul.f32 %v2234_v29, %v3005_v56 }
 0x3ed   : > { %2239 = vrcp.f32 %v1454_v61 }
 0x3ee   : > { %v1985_v25 = vpack.c.bf16 %v1541_v40, %v1538_v0  ;;  %v1987_v39 = vpack.c.bf16 %v1540_v34, %v1537_v50 }
 0x3ef   : > { %v2236_v6 = vpop.eup %2235 }
 0x3f0   : > { %v1457_v57 = vpop.xlane.xlu0 %1456  ;;  %1986 = vmatprep.subr.bf16.mxu1 %v1985_v25  ;;  %v1544_v41 = vmul.f32 %v2236_v6, %v3015_v48  ;;  %v1543_v10 = vmul.f32 %v2236_v6, %v3013_v59  ;;  %v519_v48 = vld [vmem:[%s3396_s6 + $0x30] sm:$0xff] }
 0x3f1   : > { %2241 = vrcp.f32 %v1457_v57 }
 0x3f3   : > { %v2238_v28 = vpop.eup %2237  ;;  %1988 = vmatpush1.bf16.xpose.msra.mxu1 %v1987_v39 }
 0x3f4   : > { %v1460_v37 = vpop.xlane.xlu1 %1459  ;;  %v1547_v56 = vmul.f32 %v2238_v28, %v3023_v46  ;;  %v1546_v53 = vmul.f32 %v2238_v28, %v3021_v62 }
 0x3f5   : > { %528 = vperm.xlu0 %2077, %v514_v23   ;;  %2243 = vrcp.f32 %v1460_v37 }
 0x3f6   : > { %v1989_v9 = vpack.c.bf16 %v1547_v56, %v1544_v41  ;;  %v1991_v4 = vpack.c.bf16 %v1546_v53, %v1543_v10  ;;  %v3476_v41 = vld [vmem:[#allocation10_spill] sm:$0xff]  ;;  %v3477_v56 = vld [vmem:[#allocation9_spill] sm:$0xff] }
 0x3f7   : > { %v2240_v45 = vpop.eup %2239 }
 0x3f8   : > { %v1463_v16 = vpop.xlane.xlu0 %1462  ;;  %1990 = vmatprep.subr.bf16.mxu1 %v1989_v9  ;;  %v1550_v59 = vmul.f32 %v2240_v45, %v3031_v31  ;;  %v1549_v55 = vmul.f32 %v2240_v45, %v3029_v2 }
 0x3f9   : > { %543 = vperm.xlu0 %2077, %v517_v44   ;;  %2245 = vrcp.f32 %v1463_v16  ;;  %v3478_v16 = vld [vmem:[#allocation12_spill] sm:$0xff] }
 0x3fb   : > { %v2242_v62 = vpop.eup %2241  ;;  %1992 = vmatpush1.bf16.xpose.msra.mxu1 %v1991_v4 }
 0x3fc   : > { %v1466_v46 = vpop.xlane.xlu1 %1465  ;;  %v1553_v14 = vmul.f32 %v2242_v62, %v3039_v43  ;;  %v1552_v12 = vmul.f32 %v2242_v62, %v3037_v5 }
 0x3fd   : > { %553 = vperm.xlu0 %2077, %v519_v48   ;;  %2247 = vrcp.f32 %v1466_v46  ;;  %v3479_v48 = vld [vmem:[#allocation11_spill] sm:$0xff] }
 0x3fe   : > { %v1993_v29 = vpack.c.bf16 %v1553_v14, %v1550_v59  ;;  %v1995_v61 = vpack.c.bf16 %v1552_v12, %v1549_v55 }
 0x3ff   : > { %v2244_v40 = vpop.eup %2243 }
 0x400   : > { %v1469_v0 = vpop.xlane.xlu0 %1468  ;;  %1994 = vmatprep.subr.bf16.mxu1 %v1993_v29  ;;  %v1556_v31 = vmul.f32 %v2244_v40, %v3047_v47  ;;  %v1555_v2 = vmul.f32 %v2244_v40, %v3045_v8  ;;  %v3481_v40 = vld [vmem:[#allocation14_spill] sm:$0xff] }
 0x401   : > { %1716 = vperm.xlu0 %2077, %v1905_v3   ;;  %2249 = vrcp.f32 %v1469_v0 }
 0x403   : > { %v2246_v34 = vpop.eup %2245  ;;  %1996 = vmatpush1.bf16.xpose.msra.mxu1 %v1995_v61  ;;  %v3480_v61 = vld [vmem:[#allocation15_spill] sm:$0xff] }
 0x404   : > { %v1472_v50 = vpop.xlane.xlu1 %1471  ;;  %v1559_v43 = vmul.f32 %v2246_v34, %v3055_v11  ;;  %v1558_v5 = vmul.f32 %v2246_v34, %v3053_v15  ;;  %v3482_v34 = vld [vmem:[#allocation13_spill] sm:$0xff] }
 0x405   : > { %2251 = vrcp.f32 %v1472_v50 }
 0x406   : > { %v1997_v25 = vpack.c.bf16 %v1559_v43, %v1556_v31  ;;  %v1999_v39 = vpack.c.bf16 %v1558_v5, %v1555_v2 }
 0x407   : > { %v2248_v6 = vpop.eup %2247 }
 0x408   : > { %v1475_v57 = vpop.xlane.xlu0 %1474  ;;  %1998 = vmatprep.subr.bf16.mxu1 %v1997_v25  ;;  %v1562_v37 = vmul.f32 %v2248_v6, %v3063_v52  ;;  %v1561_v15 = vmul.f32 %v2248_v6, %v3477_v56  ;;  %v3483_v25 = vld [vmem:[#allocation20_spill] sm:$0xff]  ;;  %v3484_v6 = vld [vmem:[#allocation17_spill] sm:$0xff] }
 0x409   : > { %2253 = vrcp.f32 %v1475_v57 }
 0x40b   : > { %v2250_v23 = vpop.eup %2249  ;;  %2000 = vmatpush1.bf16.xpose.msra.mxu1 %v1999_v39 }
 0x40c   : > { %v1478_v28 = vpop.xlane.xlu1 %1477  ;;  %v1565_v47 = vmul.f32 %v2250_v23, %v3071_v18  ;;  %v1564_v11 = vmul.f32 %v2250_v23, %v3476_v41  ;;  %v3485_v23 = vld [vmem:[#allocation19_spill] sm:$0xff]  ;;  %v3487_v41 = vld [vmem:[#allocation16_spill] sm:$0xff] }
 0x40d   : > { %2255 = vrcp.f32 %v1478_v28 }
 0x40e   : > { %v2001_v53 = vpack.c.bf16 %v1565_v47, %v1562_v37  ;;  %v2003_v8 = vpack.c.bf16 %v1564_v11, %v1561_v15  ;;  %v3486_v37 = vld [vmem:[#allocation18_spill] sm:$0xff] }
 0x40f   : > { %v2252_v44 = vpop.eup %2251 }
 0x410   : > { %v1481_v10 = vpop.xlane.xlu0 %1480  ;;  %2002 = vmatprep.subr.bf16.mxu1 %v2001_v53  ;;  %v1568_v45 = vmul.f32 %v2252_v44, %v3478_v16  ;;  %v1567_v62 = vmul.f32 %v2252_v44, %v3479_v48 }
 0x411   : > { %2257 = vrcp.f32 %v1481_v10 }
 0x413   : > { %v2254_v9 = vpop.eup %2253  ;;  %2004 = vmatpush1.bf16.xpose.msra.mxu1 %v2003_v8 }
 0x414   : > { %v1484_v4 = vpop.xlane.xlu1 %1483  ;;  %v1571_v52 = vmul.f32 %v2254_v9, %v3087_v58  ;;  %v1570_v18 = vmul.f32 %v2254_v9, %v3085_v49  ;;  %v3488_v9 = vld [vmem:[#allocation23_spill] sm:$0xff] }
 0x415   : > { %2259 = vrcp.f32 %v1484_v4 }
 0x416   : > { %v2005_v46 = vpack.c.bf16 %v1571_v52, %v1568_v45  ;;  %v2007_v59 = vpack.c.bf16 %v1570_v18, %v1567_v62  ;;  %v3489_v45 = vld [vmem:[#allocation22_spill] sm:$0xff] }
 0x417   : > { %v2256_v12 = vpop.eup %2255 }
 0x418   : > { %v1487_v14 = vpop.xlane.xlu0 %1486  ;;  %2006 = vmatprep.subr.bf16.mxu1 %v2005_v46  ;;  %v1574_v29 = vmul.f32 %v2256_v12, %v3095_v20  ;;  %v1573_v49 = vmul.f32 %v2256_v12, %v3482_v34 }
 0x419   : > { %2261 = vrcp.f32 %v1487_v14 }
 0x41b   : > { %v2258_v55 = vpop.eup %2257  ;;  %2008 = vmatpush1.bf16.xpose.msra.mxu1 %v2007_v59 }
 0x41c   : > { %v1490_v3 = vpop.xlane.xlu1 %1489  ;;  %v1577_v0 = vmul.f32 %v2258_v55, %v3480_v61  ;;  %v1576_v58 = vmul.f32 %v2258_v55, %v3481_v40 }
 0x41d   : > { %2263 = vrcp.f32 %v1490_v3 }
 0x41e   : > { %v2009_v50 = vpack.c.bf16 %v1577_v0, %v1574_v29  ;;  %v2011_v31 = vpack.c.bf16 %v1576_v58, %v1573_v49 }
 0x41f   : > { %v2260_v5 = vpop.eup %2259 }
 0x420   : > { %2010 = vmatprep.subr.bf16.mxu1 %v2009_v50  ;;  %v524_v43 = vpop.permute.xlu1 %523  ;;  %v1580_v20 = vmul.f32 %v2260_v5, %v3484_v6  ;;  %v1579_v11 = vmul.f32 %v2260_v5, %v3487_v41 }
 0x421   : > { %v652_v2 = vadd.f32 %v3130_v22, %v524_v43  ;;  %v654_v39 = vadd.f32 %v3483_v25, %v524_v43  ;;  %v2272_v25 = vld [vmem:[%s2551_s20 + $0x8] sm:$0xff] }
 0x423   : > { %v2262_v57 = vpop.eup %2261  ;;  %2012 = vmatpush1.bf16.xpose.msra.mxu1 %v2011_v31  ;;  %1660 = vmatprep.mubr.f32.mxu1 %v654_v39 }
 0x424   : > { %v1583_v28 = vmul.f32 %v2262_v57, %v3485_v23  ;;  %v1582_v47 = vmul.f32 %v2262_v57, %v3486_v37 }
 0x426   : > { %v2013_v56 = vpack.c.bf16 %v1583_v28, %v1580_v20  ;;  %v2015_v15 = vpack.c.bf16 %v1582_v47, %v1579_v11  ;;  %v2273_v20 = vld [vmem:[%s2551_s20 + $0x10] sm:$0xff]  ;;  %v2274_v28 = vld [vmem:[%s2551_s20 + $0x18] sm:$0xff] }
 0x427   : > { %v2264_v10 = vpop.eup %2263 }
 0x428   : > { %2014 = vmatprep.subr.bf16.mxu1 %v2013_v56  ;;  %v1586_v4 = vmul.f32 %v2264_v10, %v3488_v9  ;;  %v1585_v52 = vmul.f32 %v2264_v10, %v3489_v45 }
 0x42b   : > { %2016 = vmatpush1.bf16.xpose.msra.mxu1 %v2015_v15  ;;  %v2275_v15 = vld [vmem:[%s2551_s20 + $0x20] sm:$0xff] }
 0x451   : > { %v1496_v22 = vpop.xlane.xlu1 %1495 }
 0x464   : > { %v1493_v53 = vpop.xlane.xlu0 %1492 }
 0x465   : > { %2265 = vrcp.f32 %v1493_v53 }
 0x466   : > { %2267 = vrcp.f32 %v1496_v22  ;;  %v2276_v22 = vld [vmem:[%s2551_s20 + $0x28] sm:$0xff] }
 0x46c   : > { %v1499_v8 = vpop.xlane.xlu0 %1498 }
 0x46d   : > { %2269 = vrcp.f32 %v1499_v8 }
 0x46f   : > { %v2266_v44 = vpop.eup %2265 }
 0x470   : > { %v1589_v16 = vmul.f32 %v2266_v44, %v3165_v60  ;;  %v1588_v18 = vmul.f32 %v2266_v44, %v3161_v36  ;;  %v2268_v46 = vpop.eup %2267  ;;  %v534_v36 = vpop.permute.xlu1 %533 }
 0x471   : > { %v1592_v14 = vmul.f32 %v2268_v46, %v3140_v30  ;;  %v1591_v55 = vmul.f32 %v2268_v46, %v3138_v51  ;;  %v666_v30 = vadd.f32 %v3171_v33, %v534_v36  ;;  %v664_v51 = vadd.f32 %v3167_v17, %v534_v36 }
 0x472   : > { %v2017_v48 = vpack.c.bf16 %v1589_v16, %v1586_v4  ;;  %v2019_v62 = vpack.c.bf16 %v1588_v18, %v1585_v52  ;;  %v2277_v16 = vld [vmem:[%s2551_s20 + $0x30] sm:$0xff]  ;;  %v2278_v52 = vld [vmem:[%s2551_s20 + $0x38] sm:$0xff] }
 0x474   : > { %2018 = vmatprep.subr.bf16.mxu1 %v2017_v48  ;;  %v529_v61 = vpop.permute.xlu0 %528  ;;  %v539_v58 = vpop.permute.xlu1 %538 }
 0x475   : > { %2020 = vmatpush1.bf16.xpose.msra.mxu1 %v2019_v62  ;;  %v660_v0 = vadd.f32 %v3163_v27, %v529_v61  ;;  %v658_v40 = vadd.f32 %v3159_v32, %v529_v61  ;;  %v670_v34 = vadd.f32 %v3180_v26, %v539_v58 }
 0x477   : > { %v2270_v59 = vpop.eup %2269 }
 0x478   : > { %v1595_v12 = vmul.f32 %v2270_v59, %v3193_v42  ;;  %v1594_v3 = vmul.f32 %v2270_v59, %v3189_v38  ;;  %v672_v38 = vadd.f32 %v3182_v54, %v539_v58  ;;  %v544_v42 = vpop.permute.xlu0 %543  ;;  %v549_v49 = vpop.permute.xlu1 %548 }
 0x479   : > { %v678_v27 = vadd.f32 %v3191_v1, %v544_v42  ;;  %v676_v32 = vadd.f32 %v3187_v35, %v544_v42  ;;  %v684_v33 = vadd.f32 %v3199_v24, %v549_v49  ;;  %v682_v17 = vadd.f32 %v3195_v19, %v549_v49 }
 0x47a   : > { %v2021_v29 = vpack.c.bf16 %v1595_v12, %v1592_v14  ;;  %v2023_v60 = vpack.c.bf16 %v1594_v3, %v1591_v55  ;;  %v2279_v14 = vld [vmem:[%s2551_s20 + $0x40] sm:$0xff]  ;;  %v2280_v55 = vld [vmem:[%s2551_s20 + $0x48] sm:$0xff] }
 0x47c   : > { %2022 = vmatprep.subr.bf16.mxu1 %v2021_v29  ;;  %v554_v50 = vpop.permute.xlu0 %553  ;;  %v559_v31 = vpop.permute.xlu1 %558 }
 0x47d   : > { %2024 = vmatpush1.bf16.xpose.msra.mxu1 %v2023_v60  ;;  %v690_v54 = vadd.f32 %v3210_v7, %v554_v50  ;;  %v688_v26 = vadd.f32 %v3208_v21, %v554_v50  ;;  %v696_v1 = vadd.f32 %v3214_v63, %v559_v31  ;;  %v694_v35 = vadd.f32 %v3212_v13, %v559_v31 }
 0x480   : > { %v3285_v24 = vpop.permute.xlu0 %1716 }
 0x484   : > { %1661 = vmatmul.mubr.f32.vlgmr.msra.gmra.mrb[64].mxu1 %v652_v2  ;;  %v2271_v2 = vld [vmem:[%s2551_s20] sm:$0xff] }
 0x485   : > { %1666 = vmatprep.mubr.f32.mxu1 %v660_v0  ;;  %v2281_v0 = vld [vmem:[%s2551_s20 + $0x50] sm:$0xff] }
 0x488   : > { %1667 = vmatmul.mubr.f32.gmra.mrb[66].mxu1 %v658_v40 }
 0x489   : > { %1672 = vmatprep.mubr.f32.mxu1 %v666_v30  ;;  %v2282_v30 = vld [vmem:[%s2551_s20 + $0x58] sm:$0xff] }
 0x48c   : > { %1673 = vmatmul.mubr.f32.gmra.mrb[68].mxu1 %v664_v51 }
 0x48d   : > { %1678 = vmatprep.mubr.f32.mxu1 %v672_v38 }
 0x490   : > { %1679 = vmatmul.mubr.f32.gmra.mrb[70].mxu1 %v670_v34 }
 0x491   : > { %1684 = vmatprep.mubr.f32.mxu1 %v678_v27  ;;  %v2283_v27 = vld [vmem:[%s2551_s20 + $0x60] sm:$0xff] }
 0x494   : > { %1685 = vmatmul.mubr.f32.gmra.mrb[72].mxu1 %v676_v32  ;;  %v2284_v32 = vld [vmem:[%s2551_s20 + $0x68] sm:$0xff] }
 0x495   : > { %1690 = vmatprep.mubr.f32.mxu1 %v684_v33 }
 0x498   : > { %1691 = vmatmul.mubr.f32.gmra.mrb[74].mxu1 %v682_v17 }
 0x499   : > { %1696 = vmatprep.mubr.f32.mxu1 %v690_v54 }
 0x49c   : > { %1697 = vmatmul.mubr.f32.gmra.mrb[76].mxu1 %v688_v26  ;;  %v2285_v26 = vld [vmem:[%s2551_s20 + $0x70] sm:$0xff] }
 0x49d   : > { %1702 = vmatprep.mubr.f32.mxu1 %v696_v1 }
 0x4a0   : > { %1703 = vmatmul.mubr.f32.gmra.mrb[78].mxu1 %v694_v35  ;;  %v2286_v35 = vld [vmem:[%s2551_s20 + $0x78] sm:$0xff] }
 0x557   : > { %v1662_v19 = vpop.f32.mrb[64].mxu1 }
 0x558   : > { %v1719_v7 = vmul.f32 %v3285_v24, %v1662_v19  ;;  %v1664_v43 = vpop.f32.mrb[65].mxu1 }
 0x559   : > { %v1720_v5 = vmul.f32 %v3285_v24, %v1664_v43 }
 0x55a   : > { %v1735_v21 = vadd.f32 %v2271_v2, %v1719_v7 }
 0x55b   : > { %v1736_v39 = vadd.f32 %v2272_v25, %v1720_v5  ;;  %v1668_v63 = vpop.f32.mrb[66].mxu1 }
 0x55c   : > { %1751 = vst [vmem:[%s3293_s14] sm:$0xff] %v1735_v21  ;;  %v1721_v13 = vmul.f32 %v3285_v24, %v1668_v63  ;;  %v1670_v57 = vpop.f32.mrb[67].mxu1 }
 0x55d   : > { %1752 = vst [vmem:[%s3293_s14 + $0x8] sm:$0xff] %v1736_v39  ;;  %v1722_v6 = vmul.f32 %v3285_v24, %v1670_v57 }
 0x55e   : > { %v1737_v23 = vadd.f32 %v2273_v20, %v1721_v13 }
 0x55f   : > { %v1738_v37 = vadd.f32 %v2274_v28, %v1722_v6  ;;  %v1674_v47 = vpop.f32.mrb[68].mxu1 }
 0x560   : > { %1753 = vst [vmem:[%s3293_s14 + $0x10] sm:$0xff] %v1737_v23  ;;  %v1723_v41 = vmul.f32 %v3285_v24, %v1674_v47  ;;  %v1676_v11 = vpop.f32.mrb[69].mxu1 }
 0x561   : > { %1754 = vst [vmem:[%s3293_s14 + $0x18] sm:$0xff] %v1738_v37  ;;  %v1724_v56 = vmul.f32 %v3285_v24, %v1676_v11 }
 0x562   : > { %v1739_v53 = vadd.f32 %v2275_v15, %v1723_v41 }
 0x563   : > { %v1740_v8 = vadd.f32 %v2276_v22, %v1724_v56  ;;  %v1680_v10 = vpop.f32.mrb[70].mxu1 }
 0x564   : > { %1755 = vst [vmem:[%s3293_s14 + $0x20] sm:$0xff] %v1739_v53  ;;  %v1725_v44 = vmul.f32 %v3285_v24, %v1680_v10  ;;  %v1682_v9 = vpop.f32.mrb[71].mxu1 }
 0x565   : > { %1756 = vst [vmem:[%s3293_s14 + $0x28] sm:$0xff] %v1740_v8  ;;  %v1726_v4 = vmul.f32 %v3285_v24, %v1682_v9 }
 0x566   : > { %v1741_v45 = vadd.f32 %v2277_v16, %v1725_v44 }
 0x567   : > { %v1742_v18 = vadd.f32 %v2278_v52, %v1726_v4  ;;  %v1686_v48 = vpop.f32.mrb[72].mxu1 }
 0x568   : > { %1757 = vst [vmem:[%s3293_s14 + $0x30] sm:$0xff] %v1741_v45  ;;  %v1727_v62 = vmul.f32 %v3285_v24, %v1686_v48  ;;  %v1688_v46 = vpop.f32.mrb[73].mxu1 }
 0x569   : > { %1758 = vst [vmem:[%s3293_s14 + $0x38] sm:$0xff] %v1742_v18  ;;  %v1728_v59 = vmul.f32 %v3285_v24, %v1688_v46 }
 0x56a   : > { %v1743_v12 = vadd.f32 %v2279_v14, %v1727_v62 }
 0x56b   : > { %v1744_v3 = vadd.f32 %v2280_v55, %v1728_v59  ;;  %v1692_v29 = vpop.f32.mrb[74].mxu1 }
 0x56c   : > { %1759 = vst [vmem:[%s3293_s14 + $0x40] sm:$0xff] %v1743_v12  ;;  %v1729_v60 = vmul.f32 %v3285_v24, %v1692_v29  ;;  %v1694_v61 = vpop.f32.mrb[75].mxu1 }
 0x56d   : > { %1760 = vst [vmem:[%s3293_s14 + $0x48] sm:$0xff] %v1744_v3  ;;  %v1730_v36 = vmul.f32 %v3285_v24, %v1694_v61 }
 0x56e   : > { %v1745_v40 = vadd.f32 %v2281_v0, %v1729_v60 }
 0x56f   : > { %v1746_v58 = vadd.f32 %v2282_v30, %v1730_v36  ;;  %v1698_v51 = vpop.f32.mrb[76].mxu1 }
 0x570   : > { %1761 = vst [vmem:[%s3293_s14 + $0x50] sm:$0xff] %v1745_v40  ;;  %v1731_v38 = vmul.f32 %v3285_v24, %v1698_v51  ;;  %v1700_v42 = vpop.f32.mrb[77].mxu1 }
 0x571   : > { %1762 = vst [vmem:[%s3293_s14 + $0x58] sm:$0xff] %v1746_v58  ;;  %v1732_v34 = vmul.f32 %v3285_v24, %v1700_v42 }
 0x572   : > { %v1747_v49 = vadd.f32 %v2283_v27, %v1731_v38 }
 0x573   : > { %v1748_v33 = vadd.f32 %v2284_v32, %v1732_v34  ;;  %v1704_v50 = vpop.f32.mrb[78].mxu1 }
 0x574   : > { %1763 = vst [vmem:[%s3293_s14 + $0x60] sm:$0xff] %v1747_v49  ;;  %v1733_v17 = vmul.f32 %v3285_v24, %v1704_v50  ;;  %v1706_v54 = vpop.f32.mrb[79].mxu1 }
 0x575   : > { %1764 = vst [vmem:[%s3293_s14 + $0x68] sm:$0xff] %v1748_v33  ;;  %v1734_v31 = vmul.f32 %v3285_v24, %v1706_v54 }
 0x576   : > { %v1749_v1 = vadd.f32 %v2285_v26, %v1733_v17 }
 0x577   : > { %v1750_v19 = vadd.f32 %v2286_v35, %v1734_v31 }
 0x578   : > { %1765 = vst [vmem:[%s3293_s14 + $0x70] sm:$0xff] %v1749_v1 }
 0x579   : > { %1766 = vst [vmem:[%s3293_s14 + $0x78] sm:$0xff] %v1750_v19 }
 0x57a   : > { %2330 = shalt.err (!%p2327_p2)
}
 0x57b   : > { %s2331_s20 = scalar_lea.hbm %s3341_s17, 2048  ;;  %s2335_s14 = scalar_lea.hbm %s3398_s8, 4096 }
 0x57c   : > { %p2332_p4 = scmp.ne.s32.totalorder %s3341_s17, %s2331_s20  ;;  %p2336_p9 = scmp.lt.u32.totalorder %s3341_s17, %s3398_s8 }
 0x57d   : > { %p2337_p1 = scmp.lt.u32.totalorder %s2335_s14, %s2331_s20  ;;  %p2339_p6 = scmp.lt.u32.totalorder %s2331_s20, %s3341_s17 }
 0x57e   : > { %p2333_p5 = pnand %p2332_p4, %p3490_p11 }
 0x57f   : > { %p2338_p3 = por %p2337_p1, %p2336_p9 }
 0x580   : > { %p2334_p7 = pneg %p2333_p5 }
 0x581   : > { %p2340_p12 = por %p2339_p6, %p2338_p3 }
 0x583   : > { %p2341_p13 = pnand %p2340_p12, %p2334_p7 }
 0x585   : > { %2344 = shalt.err (!%p2341_p13)
}
 0x586   : > { %s2391_s23 = smov 256   ;;  %s2392_s25 = smov 16  }
 0x587   : > { %2027 = dma.vmem_to_hbm [thread:$0]  (%p3490_p11), %s3343_s13, 2048, %s3341_s17, %s1768_s7, %s2391_s23, %s2391_s23, %s2392_s25  }
 0x588 PF: > { %s1796_s27 = sand.u32 1, %s2371_s29   ;;  %p3491_p8 = scmp.ne.s32.totalorder %s3431_s19, 0 }
 0x589   : > { %p3492_p10 = scmp.ge.s32.totalorder %s2383_s10, 2  ;;  %s1797_s28 = scalar_lea.sflag [#allocation5], %s1796_s27 }
 0x58b   : > { %p2034_p0 = pnand %p3492_p10, %p3491_p8 }
 0x58d   : > { %2366 = dma.done.wait (!%p2034_p0), %s1797_s28, 2048  }
 0x58e   : > { %2368 = vsyncadd (!%p2034_p0), %s1797_s28, 4294965248  ;;  %p23_p2 = scmp.ge.s32.totalorder %s2466_s12, 4   ;;  %s3493_s29 = smov %s2375_s30 }
 0x58f   : > { %s3494_s30 = smov %s2379_s9  ;;  %s3495_s9 = smov %s2478_s15 }
 0x590   : > { %s3496_s10 = smov %s2466_s12  ;;  %25 = sbr.rel (!%p23_p2) target bundleno = 8 (0x8), region = 97 }
 0x597   :  { %1802 = vsyncpa [#allocation4], 1 }
 0x598   :  { %1804 = vsyncpa [#allocation4 + $0x1], 1 }
 0x599   :  { %1805 = vsyncpa [#allocation5], 1 }
 0x59a   :  { %1807 = vsyncpa [#allocation5 + $0x1], 1 }

</bundles_post_ra>
